<compile_context>
chip_gen: v7x
topology: tpu7x:2x2x1
jax: 0.10.0
libtpu: 0.0.40
codegen_flags: <defaults>
</compile_context>

<pallas_src>
import functools

import jax
import jax.numpy as jnp
from jax.experimental import pallas as pl
from jax.experimental.pallas import tpu as pltpu

LN_EPS = 1e-5


def _round_up(x, m):
    return pl.cdiv(x, m) * m


# --------------------------------------------------------------------------
# In-kernel helpers
# --------------------------------------------------------------------------
def _masked_layernorm(x, gamma, beta, n_valid):
    """LayerNorm over the last axis.  Pad lanes of x are zero, so plain lane
    sums divided by the true feature count give masked statistics."""
    inv_n = 1.0 / float(n_valid)
    mu = jnp.sum(x, axis=-1, keepdims=True) * inv_n
    var = jnp.sum(x * x, axis=-1, keepdims=True) * inv_n - mu * mu
    var = jnp.maximum(var, 0.0)
    return (x - mu) * jax.lax.rsqrt(var + LN_EPS) * gamma + beta


# --------------------------------------------------------------------------
# Fused kernel: grid = (batch_block [parallel], layer [arbitrary])
# --------------------------------------------------------------------------
def fused_cycle_kernel(emb_ref,                    # (1, T*Bb, E_pad)  f32
                       lng_ref, lnb_ref,           # (1, 1, E_pad)     f32
                       wvT_ref,                    # (1, E_pad, E_pad) bf16
                       bv_ref,                     # (1, 1, E_pad)     f32
                       coef_ref,                   # (1, bd*bd, nb_pad) f32
                       gf_ref, bf_ref,             # (1, E_pad)        f32
                       w1T_ref, b1_ref,            # (E_pad, H_pad) bf16, (1, H_pad) f32
                       w2T_ref, b2_ref,            # (H_pad, M_pad) bf16, (1, M_pad) f32
                       o_ref,                      # (1, T*Bb, M_pad)  f32
                       a_scr, v_scr,               # (T*Bb, E_pad) f32 scratch
                       *, n_layers, b_blk, seq_len, bd, nb_pad, e_true,
                       rows_grp):
    l = pl.program_id(1)
    Bb, T, R = b_blk, seq_len, rows_grp
    rows_blk = R * Bb
    n_grp = T // R

    # Layer 0: load the embedded tokens into the resident residual stream.
    @pl.when(l == 0)
    def _init():
        a_scr[...] = emb_ref[0]

    # ---- pre-norm + value projection for every token (one bf16 MXU matmul) --
    a = a_scr[...]                                            # (T*Bb, E_pad)
    y = _masked_layernorm(a, lng_ref[0], lnb_ref[0], e_true)
    v = jnp.dot(y.astype(jnp.bfloat16), wvT_ref[0],
                preferred_element_type=jnp.float32) + bv_ref[0]
    v_scr[...] = v                                            # single coalesced store

    # ---- block-diagonal linear recurrence: bd*bd VPU FMAs per step ----------
    coefs = coef_ref[0]                                       # (bd*bd, nb_pad)
    crow = [coefs[k:k + 1, :] for k in range(bd * bd)]        # (1, nb_pad) each
    res_scale = jnp.where(l == n_layers - 1, 0.0, 1.0)        # residual on all but last
    aligned = (rows_blk & (rows_blk - 1)) == 0                # static python bool

    def group(g, h_parts):
        row0 = g * rows_blk
        if aligned:
            row0 = pl.multiple_of(row0, rows_blk)
        row_ds = pl.ds(row0, rows_blk)
        v_p = [v_scr[row_ds, j * nb_pad:(j + 1) * nb_pad] for j in range(bd)]
        a_p = [a_scr[row_ds, j * nb_pad:(j + 1) * nb_pad] for j in range(bd)]
        hp = list(h_parts)
        outs = [[] for _ in range(bd)]
        for r in range(R):                                    # static unroll (R*Bb rows == 8)
            new = []
            for j in range(bd):
                acc = v_p[j][r * Bb:(r + 1) * Bb, :]
                for i in range(bd):
                    acc = acc + crow[j * bd + i] * hp[i]
                new.append(acc)
                outs[j].append(acc)
            hp = new
        for j in range(bd):
            blk = outs[j][0] if R == 1 else jnp.concatenate(outs[j], axis=0)
            a_scr[row_ds, j * nb_pad:(j + 1) * nb_pad] = blk + res_scale * a_p[j]
        return tuple(hp)

    h0 = tuple(jnp.zeros((Bb, nb_pad), jnp.float32) for _ in range(bd))
    jax.lax.fori_loop(0, n_grp, group, h0, unroll=min(4, n_grp))

    # ---- final LayerNorm + MLP head (only after the last layer) -------------
    @pl.when(l == n_layers - 1)
    def _head():
        af = a_scr[...]
        yf = _masked_layernorm(af, gf_ref[...], bf_ref[...], e_true)
        h1 = jnp.dot(yf.astype(jnp.bfloat16), w1T_ref[...],
                     preferred_element_type=jnp.float32) + b1_ref[...]
        h1 = jnp.maximum(h1, 0.0)
        logits = jnp.dot(h1.astype(jnp.bfloat16), w2T_ref[...],
                         preferred_element_type=jnp.float32) + b2_ref[...]
        o_ref[0] = logits                                     # lane-dense store


# --------------------------------------------------------------------------
# Wrapper-side weight packing (one-time layout plumbing, no in-kernel prep)
# --------------------------------------------------------------------------
def pack_params(params, block_dim):
    E = params["embedding"].shape[1]
    M = params["wo2T"].shape[1]
    L = params["wvT"].shape[0]
    bd = block_dim
    nb = E // bd
    nb_pad = int(_round_up(nb, 128))
    E_pad = bd * nb_pad
    H_pad = int(_round_up(E, 128))
    M_pad = int(_round_up(M, 128))

    # Permutation: old feature e = g*bd + i  ->  packed lane  i*nb_pad + g
    g_idx = jnp.arange(E) // bd
    i_idx = jnp.arange(E) % bd
    new_idx = i_idx * nb_pad + g_idx                          # (E,)

    def scat_last(x, width):
        out = jnp.zeros(x.shape[:-1] + (width,), jnp.float32)
        return out.at[..., new_idx].set(x)

    def scat_mat_stacked(w):                                  # (L, E, E) -> (L, E_pad, E_pad)
        tmp = jnp.zeros((L, E, E_pad), jnp.float32).at[:, :, new_idx].set(w)
        return jnp.zeros((L, E_pad, E_pad), jnp.float32).at[:, new_idx, :].set(tmp)

    # coef[l, j*bd+i, g] = A[l, g, j, i]
    coef = jnp.transpose(params["A"], (0, 2, 3, 1)).reshape(L, bd * bd, nb)
    coef = jnp.pad(coef, ((0, 0), (0, 0), (0, nb_pad - nb)))

    wo1 = jnp.pad(params["wo1T"], ((0, 0), (0, H_pad - E)))   # (E, H_pad)
    wo1_p = jnp.zeros((E_pad, H_pad), jnp.float32).at[new_idx, :].set(wo1)
    wo2_p = jnp.pad(params["wo2T"], ((0, H_pad - E), (0, M_pad - M)))

    return {
        "embedding": scat_last(params["embedding"], E_pad),                 # (M, E_pad) f32
        "ln_g": scat_last(params["ln_g"], E_pad)[:, None, :],               # (L,1,E_pad)
        "ln_b": scat_last(params["ln_b"], E_pad)[:, None, :],
        "wvT": scat_mat_stacked(params["wvT"]).astype(jnp.bfloat16),        # (L,E_pad,E_pad)
        "bv": scat_last(params["bv"], E_pad)[:, None, :],
        "coef": coef,                                                       # (L,bd*bd,nb_pad)
        "ln_final_g": scat_last(params["ln_final_g"], E_pad)[None, :],      # (1,E_pad)
        "ln_final_b": scat_last(params["ln_final_b"], E_pad)[None, :],
        "wo1T": wo1_p.astype(jnp.bfloat16),                                 # (E_pad,H_pad)
        "bo1": jnp.pad(params["bo1"], (0, H_pad - E))[None, :],             # (1,H_pad)
        "wo2T": wo2_p.astype(jnp.bfloat16),                                 # (H_pad,M_pad)
        "bo2": jnp.pad(params["bo2"], (0, M_pad - M))[None, :],             # (1,M_pad)
        "E": int(E), "M": int(M), "bd": int(bd), "nb_pad": int(nb_pad),
    }


# --------------------------------------------------------------------------
# Forward wrapper
# --------------------------------------------------------------------------
def cycle_multi_block_forward(input_x, pk):
    B, T = input_x.shape
    E, bd, nb_pad, M = pk["E"], pk["bd"], pk["nb_pad"], pk["M"]
    E_pad = bd * nb_pad
    L = pk["wvT"].shape[0]
    H_pad = pk["wo1T"].shape[-1]
    M_pad = pk["wo2T"].shape[-1]

    # batch blocking: "parallel" grid axis (shards across TCs on v7x)
    b_blk = 1
    for d in range(1, min(B, 8) + 1):
        if B % d == 0:
            b_blk = d
    n_bb = B // b_blk
    rows = T * b_blk

    # embedding gather stays in plain JAX glue (packed table -> packed lanes)
    a = pk["embedding"][input_x]                                        # (B, T, E_pad)
    a = a.reshape(n_bb, b_blk, T, E_pad).transpose(0, 2, 1, 3).reshape(n_bb, rows, E_pad)

    # timesteps per store-group so each scan store covers a full (8,128) tile
    if b_blk >= 8:
        R = 1
    elif 8 % b_blk == 0 and T % (8 // b_blk) == 0:
        R = 8 // b_blk
    else:
        R = 1

    kern = functools.partial(fused_cycle_kernel,
                             n_layers=L, b_blk=b_blk, seq_len=T,
                             bd=bd, nb_pad=nb_pad, e_true=E, rows_grp=R)

    lmap = lambda b, l: (l, 0, 0)
    bmap = lambda b, l: (b, 0, 0)
    cmap = lambda b, l: (0, 0)

    in_specs = [
        pl.BlockSpec((1, rows, E_pad), bmap),             # embedded tokens
        pl.BlockSpec((1, 1, E_pad), lmap),                # ln_g (per layer)
        pl.BlockSpec((1, 1, E_pad), lmap),                # ln_b
        pl.BlockSpec((1, E_pad, E_pad), lmap),            # WvT (bf16)
        pl.BlockSpec((1, 1, E_pad), lmap),                # bv
        pl.BlockSpec((1, bd * bd, nb_pad), lmap),         # block-diag A coefficients
        pl.BlockSpec((1, E_pad), cmap),                   # ln_final gamma
        pl.BlockSpec((1, E_pad), cmap),                   # ln_final beta
        pl.BlockSpec((E_pad, H_pad), cmap),               # Wo1T (bf16)
        pl.BlockSpec((1, H_pad), cmap),                   # bo1
        pl.BlockSpec((H_pad, M_pad), cmap),               # Wo2T (bf16)
        pl.BlockSpec((1, M_pad), cmap),                   # bo2
    ]
    out_spec = pl.BlockSpec((1, rows, M_pad), bmap)

    # size-derived VMEM budget (per-step resident set; capped for v7x)
    def _nbytes(x):
        return int(x.size) * x.dtype.itemsize
    per_layer = (_nbytes(pk["wvT"]) + _nbytes(pk["bv"]) + _nbytes(pk["ln_g"])
                 + _nbytes(pk["ln_b"]) + _nbytes(pk["coef"])) // L
    head_bytes = (_nbytes(pk["wo1T"]) + _nbytes(pk["wo2T"]) + _nbytes(pk["bo1"])
                  + _nbytes(pk["bo2"]) + _nbytes(pk["ln_final_g"])
                  + _nbytes(pk["ln_final_b"]))
    resident = (2 * per_layer + head_bytes
                + 2 * rows * E_pad * 4 + 2 * rows * M_pad * 4
                + 2 * rows * E_pad * 4)
    vmem_limit = int(min(48 << 20, max(16 << 20, 2 * resident + (4 << 20))))

    out = pl.pallas_call(
        kern,
        out_shape=jax.ShapeDtypeStruct((n_bb, rows, M_pad), jnp.float32),
        grid_spec=pltpu.PrefetchScalarGridSpec(
            num_scalar_prefetch=0,
            grid=(n_bb, L),
            in_specs=in_specs,
            out_specs=out_spec,
            scratch_shapes=[pltpu.VMEM((rows, E_pad), jnp.float32),   # residual stream
                            pltpu.VMEM((rows, E_pad), jnp.float32)]), # values v
        compiler_params=pltpu.CompilerParams(
            dimension_semantics=("parallel", "arbitrary"),
            vmem_limit_bytes=vmem_limit),
    )(a, pk["ln_g"], pk["ln_b"], pk["wvT"], pk["bv"], pk["coef"],
      pk["ln_final_g"], pk["ln_final_b"], pk["wo1T"], pk["bo1"],
      pk["wo2T"], pk["bo2"])

    out = out.reshape(n_bb, T, b_blk, M_pad).transpose(0, 2, 1, 3).reshape(B, T, M_pad)
    return out[..., :M]


# --------------------------------------------------------------------------
# Parameter init (deterministic, synthetic) in the ORIGINAL layout
# --------------------------------------------------------------------------
def init_params(key, M, emb_dim, block_dim, n_layers):
    nb = emb_dim // block_dim
    ks = jax.random.split(key, 8)
    kl = jax.random.split(ks[7], n_layers)
    wvT, bv, A, lng, lnb = [], [], [], [], []
    for i in range(n_layers):
        k1, k2, k3, k4, k5 = jax.random.split(kl[i], 5)
        wvT.append(0.02 * jax.random.normal(k1, (emb_dim, emb_dim), jnp.float32))
        bv.append(0.01 * jax.random.normal(k2, (emb_dim,), jnp.float32))
        A.append(0.1 * jax.random.normal(k3, (nb, block_dim, block_dim), jnp.float32))
        lng.append(1.0 + 0.1 * jax.random.normal(k4, (emb_dim,), jnp.float32))
        lnb.append(0.05 * jax.random.normal(k5, (emb_dim,), jnp.float32))
    return {
        "embedding": 0.02 * jax.random.normal(ks[0], (M, emb_dim), jnp.float32),
        "ln_g": jnp.stack(lng), "ln_b": jnp.stack(lnb),          # (L, E)
        "wvT": jnp.stack(wvT), "bv": jnp.stack(bv),              # (L,E,E), (L,E)
        "A": jnp.stack(A),                                       # (L, nb, bd, bd)
        "ln_final_g": 1.0 + 0.1 * jax.random.normal(ks[1], (emb_dim,), jnp.float32),
        "ln_final_b": 0.05 * jax.random.normal(ks[2], (emb_dim,), jnp.float32),
        "wo1T": 0.02 * jax.random.normal(ks[3], (emb_dim, emb_dim), jnp.float32),
        "bo1": 0.01 * jax.random.normal(ks[4], (emb_dim,), jnp.float32),
        "wo2T": 0.02 * jax.random.normal(ks[5], (emb_dim, M), jnp.float32),
        "bo2": 0.01 * jax.random.normal(ks[6], (M,), jnp.float32),
    }


# --------------------------------------------------------------------------
# Pure-JAX reference (same assumed BlockModel math) for a correctness check
# --------------------------------------------------------------------------
def reference_forward(input_x, params):
    def ln(x, g, b):
        mu = x.mean(-1, keepdims=True)
        xc = x - mu
        var = (xc * xc).mean(-1, keepdims=True)
        return xc * jax.lax.rsqrt(var + LN_EPS) * g + b

    a = params["embedding"][input_x]                             # (B, T, E)
    L = params["wvT"].shape[0]
    nb, bd = params["A"].shape[1], params["A"].shape[2]
    Bsz, T, E = a.shape
    for l in range(L):
        y = ln(a, params["ln_g"][l], params["ln_b"][l])
        v = y @ params["wvT"][l] + params["bv"][l]
        A = params["A"][l]
        h = jnp.zeros((Bsz, E), jnp.float32)
        outs = []
        for t in range(T):
            hb = h.reshape(Bsz, nb, bd)
            h = jnp.einsum('gji,bgi->bgj', A, hb).reshape(Bsz, E) + v[:, t, :]
            outs.append(h)
        out = jnp.stack(outs, axis=1)
        a = out + a if l < L - 1 else out
    y = ln(a, params["ln_final_g"], params["ln_final_b"])
    h1 = jnp.maximum(y @ params["wo1T"] + params["bo1"], 0.0)
    return h1 @ params["wo2T"] + params["bo2"]


if __name__ == "__main__":
    M, emb_dim, block_dim, n_layers = 5, 32, 2, 2
    B, T = 2, 8

    key = jax.random.PRNGKey(0)
    k_params, k_input = jax.random.split(key)
    params = init_params(k_params, M, emb_dim, block_dim, n_layers)
    input_x = jax.random.randint(k_input, (B, T), 0, M, dtype=jnp.int32)

    packed = pack_params(params, block_dim)
    out = cycle_multi_block_forward(input_x, packed)
    out = jax.block_until_ready(out)
    assert out.shape == (B, T, M), out.shape
    assert bool(jnp.all(jnp.isfinite(out)))

    ref = reference_forward(input_x, params)
    max_err = float(jnp.max(jnp.abs(out - ref)))
    assert bool(jnp.allclose(out, ref, atol=3e-3, rtol=3e-2)), max_err

    print("KERNEL_OK")
</pallas_src>

<mosaic_0001>
module attributes {stable_mosaic.version = 11 : i64} {
  func.func @fused_cycle_kernel(%arg0: i32, %arg1: i32, %arg2: memref<1x16x256xf32, #tpu.memory_space<vmem>>, %arg3: memref<1x1x256xf32, #tpu.memory_space<vmem>>, %arg4: memref<1x1x256xf32, #tpu.memory_space<vmem>>, %arg5: memref<1x256x256xbf16, #tpu.memory_space<vmem>>, %arg6: memref<1x1x256xf32, #tpu.memory_space<vmem>>, %arg7: memref<1x4x128xf32, #tpu.memory_space<vmem>>, %arg8: memref<1x256xf32, #tpu.memory_space<vmem>>, %arg9: memref<1x256xf32, #tpu.memory_space<vmem>>, %arg10: memref<256x128xbf16, #tpu.memory_space<vmem>>, %arg11: memref<1x128xf32, #tpu.memory_space<vmem>>, %arg12: memref<128x128xbf16, #tpu.memory_space<vmem>>, %arg13: memref<1x128xf32, #tpu.memory_space<vmem>>, %arg14: memref<1x16x128xf32, #tpu.memory_space<vmem>>, %arg15: memref<16x256xf32, #tpu.memory_space<vmem>>, %arg16: memref<16x256xf32, #tpu.memory_space<vmem>>) attributes {dimension_semantics = [#tpu.dimension_semantics<parallel>, #tpu.dimension_semantics<arbitrary>], iteration_bounds = array<i64: 1, 2>, scalar_prefetch = 0 : i64, scratch_operands = 2 : i64, tpu.core_type = #tpu.core_type<tc>, window_params = [{transform_indices = @transform_0, window_bounds = array<i64: 1, 16, 256>}, {transform_indices = @transform_1, window_bounds = array<i64: 1, 1, 256>}, {transform_indices = @transform_2, window_bounds = array<i64: 1, 1, 256>}, {transform_indices = @transform_3, window_bounds = array<i64: 1, 256, 256>}, {transform_indices = @transform_4, window_bounds = array<i64: 1, 1, 256>}, {transform_indices = @transform_5, window_bounds = array<i64: 1, 4, 128>}, {pipeline_mode = #tpu.pipeline_mode<synchronous>, transform_indices = @transform_6, window_bounds = array<i64: 1, 256>}, {pipeline_mode = #tpu.pipeline_mode<synchronous>, transform_indices = @transform_7, window_bounds = array<i64: 1, 256>}, {pipeline_mode = #tpu.pipeline_mode<synchronous>, transform_indices = @transform_8, window_bounds = array<i64: 256, 128>}, {pipeline_mode = #tpu.pipeline_mode<synchronous>, transform_indices = @transform_9, window_bounds = array<i64: 1, 128>}, {pipeline_mode = #tpu.pipeline_mode<synchronous>, transform_indices = @transform_10, window_bounds = array<i64: 128, 128>}, {pipeline_mode = #tpu.pipeline_mode<synchronous>, transform_indices = @transform_11, window_bounds = array<i64: 1, 128>}, {transform_indices = @transform_12, window_bounds = array<i64: 1, 16, 128>}]} {
    %c0_i32 = arith.constant 0 : i32
    %0 = arith.cmpi eq, %arg1, %c0_i32 : i32
    %1 = arith.extui %0 : i1 to i32
    %c0_i32_0 = arith.constant 0 : i32
    %2 = arith.cmpi ne, %1, %c0_i32_0 : i32
    scf.if %2 {
      %c0_45 = arith.constant 0 : index
      %c0_46 = arith.constant 0 : index
      %c0_47 = arith.constant 0 : index
      %210 = vector.load %arg2[%c0_45, %c0_46, %c0_47] : memref<1x16x256xf32, #tpu.memory_space<vmem>>, vector<1x16x256xf32>
      %211 = vector.shape_cast %210 : vector<1x16x256xf32> to vector<16x256xf32>
      %c0_48 = arith.constant 0 : index
      %c0_49 = arith.constant 0 : index
      %212 = vector.load %arg15[%c0_48, %c0_49] : memref<16x256xf32, #tpu.memory_space<vmem>>, vector<16x256xf32>
      tpu.vector_store %arg15[%c0_48, %c0_49], %211 {strides = array<i32>} : memref<16x256xf32, #tpu.memory_space<vmem>>, vector<16x256xf32>,
    } else {
    }
    %c0 = arith.constant 0 : index
    %c0_1 = arith.constant 0 : index
    %3 = vector.load %arg15[%c0, %c0_1] : memref<16x256xf32, #tpu.memory_space<vmem>>, vector<16x256xf32>
    %c0_2 = arith.constant 0 : index
    %c0_3 = arith.constant 0 : index
    %c0_4 = arith.constant 0 : index
    %4 = vector.load %arg3[%c0_2, %c0_3, %c0_4] : memref<1x1x256xf32, #tpu.memory_space<vmem>>, vector<1x1x256xf32>
    %5 = vector.shape_cast %4 : vector<1x1x256xf32> to vector<1x256xf32>
    %c0_5 = arith.constant 0 : index
    %c0_6 = arith.constant 0 : index
    %c0_7 = arith.constant 0 : index
    %6 = vector.load %arg4[%c0_5, %c0_6, %c0_7] : memref<1x1x256xf32, #tpu.memory_space<vmem>>, vector<1x1x256xf32>
    %7 = vector.shape_cast %6 : vector<1x1x256xf32> to vector<1x256xf32>
    %cst = arith.constant dense<0.000000e+00> : vector<16xf32>
    %8 = vector.multi_reduction <add>, %3, %cst [1] : vector<16x256xf32> to vector<16xf32>
    %9 = vector.shape_cast %8 : vector<16xf32> to vector<16x1xf32>
    %cst_8 = arith.constant 3.125000e-02 : f32
    %10 = vector.broadcast %cst_8 : f32 to vector<16x1xf32>
    %11 = arith.mulf %9, %10 : vector<16x1xf32>
    %12 = arith.mulf %3, %3 : vector<16x256xf32>
    %cst_9 = arith.constant dense<0.000000e+00> : vector<16xf32>
    %13 = vector.multi_reduction <add>, %12, %cst_9 [1] : vector<16x256xf32> to vector<16xf32>
    %14 = vector.shape_cast %13 : vector<16xf32> to vector<16x1xf32>
    %cst_10 = arith.constant 3.125000e-02 : f32
    %15 = vector.broadcast %cst_10 : f32 to vector<16x1xf32>
    %16 = arith.mulf %14, %15 : vector<16x1xf32>
    %17 = arith.mulf %11, %11 : vector<16x1xf32>
    %18 = arith.subf %16, %17 : vector<16x1xf32>
    %cst_11 = arith.constant 0.000000e+00 : f32
    %19 = vector.broadcast %cst_11 : f32 to vector<16x1xf32>
    %20 = arith.maximumf %18, %19 : vector<16x1xf32>
    %21 = vector.broadcast %11 : vector<16x1xf32> to vector<16x256xf32>
    %22 = arith.subf %3, %21 : vector<16x256xf32>
    %cst_12 = arith.constant 9.99999974E-6 : f32
    %23 = vector.broadcast %cst_12 : f32 to vector<16x1xf32>
    %24 = arith.addf %20, %23 : vector<16x1xf32>
    %25 = math.rsqrt %24 : vector<16x1xf32>
    %26 = vector.broadcast %25 : vector<16x1xf32> to vector<16x256xf32>
    %27 = arith.mulf %22, %26 : vector<16x256xf32>
    %28 = vector.broadcast %5 : vector<1x256xf32> to vector<16x256xf32>
    %29 = arith.mulf %27, %28 : vector<16x256xf32>
    %30 = vector.broadcast %7 : vector<1x256xf32> to vector<16x256xf32>
    %31 = arith.addf %29, %30 : vector<16x256xf32>
    %32 = arith.truncf %31 : vector<16x256xf32> to vector<16x256xbf16>
    %c0_13 = arith.constant 0 : index
    %c0_14 = arith.constant 0 : index
    %c0_15 = arith.constant 0 : index
    %33 = vector.load %arg5[%c0_13, %c0_14, %c0_15] : memref<1x256x256xbf16, #tpu.memory_space<vmem>>, vector<1x256x256xbf16>
    %34 = vector.shape_cast %33 : vector<1x256x256xbf16> to vector<256x256xbf16>
    %cst_16 = arith.constant dense<0.000000e+00> : vector<16x256xf32>
    %35 = tpu.matmul %32, %34, %cst_16 {dimension_numbers = #tpu.dot_dimension_numbers<[1], [0], [0], [1], [0, 0, 1, 1], [], []>} : vector<16x256xbf16>, vector<256x256xbf16>, vector<16x256xf32> -> vector<16x256xf32>
    %c0_17 = arith.constant 0 : index
    %c0_18 = arith.constant 0 : index
    %c0_19 = arith.constant 0 : index
    %36 = vector.load %arg6[%c0_17, %c0_18, %c0_19] : memref<1x1x256xf32, #tpu.memory_space<vmem>>, vector<1x1x256xf32>
    %37 = vector.shape_cast %36 : vector<1x1x256xf32> to vector<1x256xf32>
    %38 = vector.broadcast %37 : vector<1x256xf32> to vector<16x256xf32>
    %39 = arith.addf %35, %38 : vector<16x256xf32>
    %c0_20 = arith.constant 0 : index
    %c0_21 = arith.constant 0 : index
    %40 = vector.load %arg16[%c0_20, %c0_21] : memref<16x256xf32, #tpu.memory_space<vmem>>, vector<16x256xf32>
    tpu.vector_store %arg16[%c0_20, %c0_21], %39 {strides = array<i32>} : memref<16x256xf32, #tpu.memory_space<vmem>>, vector<16x256xf32>,
    %c0_22 = arith.constant 0 : index
    %c0_23 = arith.constant 0 : index
    %c0_24 = arith.constant 0 : index
    %41 = vector.load %arg7[%c0_22, %c0_23, %c0_24] : memref<1x4x128xf32, #tpu.memory_space<vmem>>, vector<1x4x128xf32>
    %42 = vector.shape_cast %41 : vector<1x4x128xf32> to vector<4x128xf32>
    %43 = vector.extract_strided_slice %42 {offsets = [0, 0], sizes = [1, 128], strides = [1, 1]} : vector<4x128xf32> to vector<1x128xf32>
    %44 = vector.extract_strided_slice %42 {offsets = [1, 0], sizes = [1, 128], strides = [1, 1]} : vector<4x128xf32> to vector<1x128xf32>
    %45 = vector.extract_strided_slice %42 {offsets = [2, 0], sizes = [1, 128], strides = [1, 1]} : vector<4x128xf32> to vector<1x128xf32>
    %46 = vector.extract_strided_slice %42 {offsets = [3, 0], sizes = [1, 128], strides = [1, 1]} : vector<4x128xf32> to vector<1x128xf32>
    %c1_i32 = arith.constant 1 : i32
    %47 = arith.cmpi eq, %arg1, %c1_i32 : i32
    %cst_25 = arith.constant 0.000000e+00 : f32
    %cst_26 = arith.constant 1.000000e+00 : f32
    %48 = arith.select %47, %cst_25, %cst_26 : f32
    %cst_27 = arith.constant 0.000000e+00 : f32
    %49 = vector.broadcast %cst_27 : f32 to vector<2x128xf32>
    %cst_28 = arith.constant 0.000000e+00 : f32
    %50 = vector.broadcast %cst_28 : f32 to vector<2x128xf32>
    %c0_i32_29 = arith.constant 0 : i32
    %c8_i32 = arith.constant 8 : i32
    %51 = arith.muli %c0_i32_29, %c8_i32 : i32
    %52 = tpu.assume_multiple %51, 8 : i32
    %53 = arith.index_cast %52 : i32 to index
    %c0_30 = arith.constant 0 : index
    %54 = vector.load %arg16[%53, %c0_30] : memref<16x256xf32, #tpu.memory_space<vmem>>, vector<8x128xf32>
    %55 = arith.index_cast %52 : i32 to index
    %c128 = arith.constant 128 : index
    %56 = vector.load %arg16[%55, %c128] : memref<16x256xf32, #tpu.memory_space<vmem>>, vector<8x128xf32>
    %57 = arith.index_cast %52 : i32 to index
    %c0_31 = arith.constant 0 : index
    %58 = vector.load %arg15[%57, %c0_31] : memref<16x256xf32, #tpu.memory_space<vmem>>, vector<8x128xf32>
    %59 = arith.index_cast %52 : i32 to index
    %c128_32 = arith.constant 128 : index
    %60 = vector.load %arg15[%59, %c128_32] : memref<16x256xf32, #tpu.memory_space<vmem>>, vector<8x128xf32>
    %61 = vector.extract_strided_slice %54 {offsets = [0, 0], sizes = [2, 128], strides = [1, 1]} : vector<8x128xf32> to vector<2x128xf32>
    %62 = vector.broadcast %43 : vector<1x128xf32> to vector<2x128xf32>
    %63 = arith.mulf %62, %49 : vector<2x128xf32>
    %64 = arith.addf %61, %63 : vector<2x128xf32>
    %65 = vector.broadcast %44 : vector<1x128xf32> to vector<2x128xf32>
    %66 = arith.mulf %65, %50 : vector<2x128xf32>
    %67 = arith.addf %64, %66 : vector<2x128xf32>
    %68 = vector.extract_strided_slice %56 {offsets = [0, 0], sizes = [2, 128], strides = [1, 1]} : vector<8x128xf32> to vector<2x128xf32>
    %69 = vector.broadcast %45 : vector<1x128xf32> to vector<2x128xf32>
    %70 = arith.mulf %69, %49 : vector<2x128xf32>
    %71 = arith.addf %68, %70 : vector<2x128xf32>
    %72 = vector.broadcast %46 : vector<1x128xf32> to vector<2x128xf32>
    %73 = arith.mulf %72, %50 : vector<2x128xf32>
    %74 = arith.addf %71, %73 : vector<2x128xf32>
    %75 = vector.extract_strided_slice %54 {offsets = [2, 0], sizes = [2, 128], strides = [1, 1]} : vector<8x128xf32> to vector<2x128xf32>
    %76 = vector.broadcast %43 : vector<1x128xf32> to vector<2x128xf32>
    %77 = arith.mulf %76, %67 : vector<2x128xf32>
    %78 = arith.addf %75, %77 : vector<2x128xf32>
    %79 = vector.broadcast %44 : vector<1x128xf32> to vector<2x128xf32>
    %80 = arith.mulf %79, %74 : vector<2x128xf32>
    %81 = arith.addf %78, %80 : vector<2x128xf32>
    %82 = vector.extract_strided_slice %56 {offsets = [2, 0], sizes = [2, 128], strides = [1, 1]} : vector<8x128xf32> to vector<2x128xf32>
    %83 = vector.broadcast %45 : vector<1x128xf32> to vector<2x128xf32>
    %84 = arith.mulf %83, %67 : vector<2x128xf32>
    %85 = arith.addf %82, %84 : vector<2x128xf32>
    %86 = vector.broadcast %46 : vector<1x128xf32> to vector<2x128xf32>
    %87 = arith.mulf %86, %74 : vector<2x128xf32>
    %88 = arith.addf %85, %87 : vector<2x128xf32>
    %89 = vector.extract_strided_slice %54 {offsets = [4, 0], sizes = [2, 128], strides = [1, 1]} : vector<8x128xf32> to vector<2x128xf32>
    %90 = vector.broadcast %43 : vector<1x128xf32> to vector<2x128xf32>
    %91 = arith.mulf %90, %81 : vector<2x128xf32>
    %92 = arith.addf %89, %91 : vector<2x128xf32>
    %93 = vector.broadcast %44 : vector<1x128xf32> to vector<2x128xf32>
    %94 = arith.mulf %93, %88 : vector<2x128xf32>
    %95 = arith.addf %92, %94 : vector<2x128xf32>
    %96 = vector.extract_strided_slice %56 {offsets = [4, 0], sizes = [2, 128], strides = [1, 1]} : vector<8x128xf32> to vector<2x128xf32>
    %97 = vector.broadcast %45 : vector<1x128xf32> to vector<2x128xf32>
    %98 = arith.mulf %97, %81 : vector<2x128xf32>
    %99 = arith.addf %96, %98 : vector<2x128xf32>
    %100 = vector.broadcast %46 : vector<1x128xf32> to vector<2x128xf32>
    %101 = arith.mulf %100, %88 : vector<2x128xf32>
    %102 = arith.addf %99, %101 : vector<2x128xf32>
    %103 = vector.extract_strided_slice %54 {offsets = [6, 0], sizes = [2, 128], strides = [1, 1]} : vector<8x128xf32> to vector<2x128xf32>
    %104 = vector.broadcast %43 : vector<1x128xf32> to vector<2x128xf32>
    %105 = arith.mulf %104, %95 : vector<2x128xf32>
    %106 = arith.addf %103, %105 : vector<2x128xf32>
    %107 = vector.broadcast %44 : vector<1x128xf32> to vector<2x128xf32>
    %108 = arith.mulf %107, %102 : vector<2x128xf32>
    %109 = arith.addf %106, %108 : vector<2x128xf32>
    %110 = vector.extract_strided_slice %56 {offsets = [6, 0], sizes = [2, 128], strides = [1, 1]} : vector<8x128xf32> to vector<2x128xf32>
    %111 = vector.broadcast %45 : vector<1x128xf32> to vector<2x128xf32>
    %112 = arith.mulf %111, %95 : vector<2x128xf32>
    %113 = arith.addf %110, %112 : vector<2x128xf32>
    %114 = vector.broadcast %46 : vector<1x128xf32> to vector<2x128xf32>
    %115 = arith.mulf %114, %102 : vector<2x128xf32>
    %116 = arith.addf %113, %115 : vector<2x128xf32>
    %117 = tpu.concatenate %67, %81, %95, %109 in 0 : vector<2x128xf32>, vector<2x128xf32>, vector<2x128xf32>, vector<2x128xf32> -> vector<8x128xf32>
    %118 = vector.broadcast %48 : f32 to vector<8x128xf32>
    %119 = arith.mulf %118, %58 : vector<8x128xf32>
    %120 = arith.addf %117, %119 : vector<8x128xf32>
    %121 = arith.index_cast %52 : i32 to index
    %c0_33 = arith.constant 0 : index
    %122 = vector.load %arg15[%121, %c0_33] : memref<16x256xf32, #tpu.memory_space<vmem>>, vector<8x128xf32>
    tpu.vector_store %arg15[%121, %c0_33], %120 {strides = array<i32>} : memref<16x256xf32, #tpu.memory_space<vmem>>, vector<8x128xf32>,
    %123 = tpu.concatenate %74, %88, %102, %116 in 0 : vector<2x128xf32>, vector<2x128xf32>, vector<2x128xf32>, vector<2x128xf32> -> vector<8x128xf32>
    %124 = vector.broadcast %48 : f32 to vector<8x128xf32>
    %125 = arith.mulf %124, %60 : vector<8x128xf32>
    %126 = arith.addf %123, %125 : vector<8x128xf32>
    %127 = arith.index_cast %52 : i32 to index
    %c128_34 = arith.constant 128 : index
    %128 = vector.load %arg15[%127, %c128_34] : memref<16x256xf32, #tpu.memory_space<vmem>>, vector<8x128xf32>
    tpu.vector_store %arg15[%127, %c128_34], %126 {strides = array<i32>} : memref<16x256xf32, #tpu.memory_space<vmem>>, vector<8x128xf32>,
    %c1_i32_35 = arith.constant 1 : i32
    %c8_i32_36 = arith.constant 8 : i32
    %129 = arith.muli %c1_i32_35, %c8_i32_36 : i32
    %130 = tpu.assume_multiple %129, 8 : i32
    %131 = arith.index_cast %130 : i32 to index
    %c0_37 = arith.constant 0 : index
    %132 = vector.load %arg16[%131, %c0_37] : memref<16x256xf32, #tpu.memory_space<vmem>>, vector<8x128xf32>
    %133 = arith.index_cast %130 : i32 to index
    %c128_38 = arith.constant 128 : index
    %134 = vector.load %arg16[%133, %c128_38] : memref<16x256xf32, #tpu.memory_space<vmem>>, vector<8x128xf32>
    %135 = arith.index_cast %130 : i32 to index
    %c0_39 = arith.constant 0 : index
    %136 = vector.load %arg15[%135, %c0_39] : memref<16x256xf32, #tpu.memory_space<vmem>>, vector<8x128xf32>
    %137 = arith.index_cast %130 : i32 to index
    %c128_40 = arith.constant 128 : index
    %138 = vector.load %arg15[%137, %c128_40] : memref<16x256xf32, #tpu.memory_space<vmem>>, vector<8x128xf32>
    %139 = vector.extract_strided_slice %132 {offsets = [0, 0], sizes = [2, 128], strides = [1, 1]} : vector<8x128xf32> to vector<2x128xf32>
    %140 = vector.broadcast %43 : vector<1x128xf32> to vector<2x128xf32>
    %141 = arith.mulf %140, %109 : vector<2x128xf32>
    %142 = arith.addf %139, %141 : vector<2x128xf32>
    %143 = vector.broadcast %44 : vector<1x128xf32> to vector<2x128xf32>
    %144 = arith.mulf %143, %116 : vector<2x128xf32>
    %145 = arith.addf %142, %144 : vector<2x128xf32>
    %146 = vector.extract_strided_slice %134 {offsets = [0, 0], sizes = [2, 128], strides = [1, 1]} : vector<8x128xf32> to vector<2x128xf32>
    %147 = vector.broadcast %45 : vector<1x128xf32> to vector<2x128xf32>
    %148 = arith.mulf %147, %109 : vector<2x128xf32>
    %149 = arith.addf %146, %148 : vector<2x128xf32>
    %150 = vector.broadcast %46 : vector<1x128xf32> to vector<2x128xf32>
    %151 = arith.mulf %150, %116 : vector<2x128xf32>
    %152 = arith.addf %149, %151 : vector<2x128xf32>
    %153 = vector.extract_strided_slice %132 {offsets = [2, 0], sizes = [2, 128], strides = [1, 1]} : vector<8x128xf32> to vector<2x128xf32>
    %154 = vector.broadcast %43 : vector<1x128xf32> to vector<2x128xf32>
    %155 = arith.mulf %154, %145 : vector<2x128xf32>
    %156 = arith.addf %153, %155 : vector<2x128xf32>
    %157 = vector.broadcast %44 : vector<1x128xf32> to vector<2x128xf32>
    %158 = arith.mulf %157, %152 : vector<2x128xf32>
    %159 = arith.addf %156, %158 : vector<2x128xf32>
    %160 = vector.extract_strided_slice %134 {offsets = [2, 0], sizes = [2, 128], strides = [1, 1]} : vector<8x128xf32> to vector<2x128xf32>
    %161 = vector.broadcast %45 : vector<1x128xf32> to vector<2x128xf32>
    %162 = arith.mulf %161, %145 : vector<2x128xf32>
    %163 = arith.addf %160, %162 : vector<2x128xf32>
    %164 = vector.broadcast %46 : vector<1x128xf32> to vector<2x128xf32>
    %165 = arith.mulf %164, %152 : vector<2x128xf32>
    %166 = arith.addf %163, %165 : vector<2x128xf32>
    %167 = vector.extract_strided_slice %132 {offsets = [4, 0], sizes = [2, 128], strides = [1, 1]} : vector<8x128xf32> to vector<2x128xf32>
    %168 = vector.broadcast %43 : vector<1x128xf32> to vector<2x128xf32>
    %169 = arith.mulf %168, %159 : vector<2x128xf32>
    %170 = arith.addf %167, %169 : vector<2x128xf32>
    %171 = vector.broadcast %44 : vector<1x128xf32> to vector<2x128xf32>
    %172 = arith.mulf %171, %166 : vector<2x128xf32>
    %173 = arith.addf %170, %172 : vector<2x128xf32>
    %174 = vector.extract_strided_slice %134 {offsets = [4, 0], sizes = [2, 128], strides = [1, 1]} : vector<8x128xf32> to vector<2x128xf32>
    %175 = vector.broadcast %45 : vector<1x128xf32> to vector<2x128xf32>
    %176 = arith.mulf %175, %159 : vector<2x128xf32>
    %177 = arith.addf %174, %176 : vector<2x128xf32>
    %178 = vector.broadcast %46 : vector<1x128xf32> to vector<2x128xf32>
    %179 = arith.mulf %178, %166 : vector<2x128xf32>
    %180 = arith.addf %177, %179 : vector<2x128xf32>
    %181 = vector.extract_strided_slice %132 {offsets = [6, 0], sizes = [2, 128], strides = [1, 1]} : vector<8x128xf32> to vector<2x128xf32>
    %182 = vector.broadcast %43 : vector<1x128xf32> to vector<2x128xf32>
    %183 = arith.mulf %182, %173 : vector<2x128xf32>
    %184 = arith.addf %181, %183 : vector<2x128xf32>
    %185 = vector.broadcast %44 : vector<1x128xf32> to vector<2x128xf32>
    %186 = arith.mulf %185, %180 : vector<2x128xf32>
    %187 = arith.addf %184, %186 : vector<2x128xf32>
    %188 = vector.extract_strided_slice %134 {offsets = [6, 0], sizes = [2, 128], strides = [1, 1]} : vector<8x128xf32> to vector<2x128xf32>
    %189 = vector.broadcast %45 : vector<1x128xf32> to vector<2x128xf32>
    %190 = arith.mulf %189, %173 : vector<2x128xf32>
    %191 = arith.addf %188, %190 : vector<2x128xf32>
    %192 = vector.broadcast %46 : vector<1x128xf32> to vector<2x128xf32>
    %193 = arith.mulf %192, %180 : vector<2x128xf32>
    %194 = arith.addf %191, %193 : vector<2x128xf32>
    %195 = tpu.concatenate %145, %159, %173, %187 in 0 : vector<2x128xf32>, vector<2x128xf32>, vector<2x128xf32>, vector<2x128xf32> -> vector<8x128xf32>
    %196 = vector.broadcast %48 : f32 to vector<8x128xf32>
    %197 = arith.mulf %196, %136 : vector<8x128xf32>
    %198 = arith.addf %195, %197 : vector<8x128xf32>
    %199 = arith.index_cast %130 : i32 to index
    %c0_41 = arith.constant 0 : index
    %200 = vector.load %arg15[%199, %c0_41] : memref<16x256xf32, #tpu.memory_space<vmem>>, vector<8x128xf32>
    tpu.vector_store %arg15[%199, %c0_41], %198 {strides = array<i32>} : memref<16x256xf32, #tpu.memory_space<vmem>>, vector<8x128xf32>,
    %201 = tpu.concatenate %152, %166, %180, %194 in 0 : vector<2x128xf32>, vector<2x128xf32>, vector<2x128xf32>, vector<2x128xf32> -> vector<8x128xf32>
    %202 = vector.broadcast %48 : f32 to vector<8x128xf32>
    %203 = arith.mulf %202, %138 : vector<8x128xf32>
    %204 = arith.addf %201, %203 : vector<8x128xf32>
    %205 = arith.index_cast %130 : i32 to index
    %c128_42 = arith.constant 128 : index
    %206 = vector.load %arg15[%205, %c128_42] : memref<16x256xf32, #tpu.memory_space<vmem>>, vector<8x128xf32>
    tpu.vector_store %arg15[%205, %c128_42], %204 {strides = array<i32>} : memref<16x256xf32, #tpu.memory_space<vmem>>, vector<8x128xf32>,
    %c2_i32 = arith.constant 2 : i32
    %c1_i32_43 = arith.constant 1 : i32
    %207 = arith.cmpi eq, %arg1, %c1_i32_43 : i32
    %208 = arith.extui %207 : i1 to i32
    %c0_i32_44 = arith.constant 0 : i32
    %209 = arith.cmpi ne, %208, %c0_i32_44 : i32
    scf.if %209 {
      %c0_45 = arith.constant 0 : index
      %c0_46 = arith.constant 0 : index
      %210 = vector.load %arg15[%c0_45, %c0_46] : memref<16x256xf32, #tpu.memory_space<vmem>>, vector<16x256xf32>
      %c0_47 = arith.constant 0 : index
      %c0_48 = arith.constant 0 : index
      %211 = vector.load %arg8[%c0_47, %c0_48] : memref<1x256xf32, #tpu.memory_space<vmem>>, vector<1x256xf32>
      %c0_49 = arith.constant 0 : index
      %c0_50 = arith.constant 0 : index
      %212 = vector.load %arg9[%c0_49, %c0_50] : memref<1x256xf32, #tpu.memory_space<vmem>>, vector<1x256xf32>
      %cst_51 = arith.constant dense<0.000000e+00> : vector<16xf32>
      %213 = vector.multi_reduction <add>, %210, %cst_51 [1] : vector<16x256xf32> to vector<16xf32>
      %214 = vector.shape_cast %213 : vector<16xf32> to vector<16x1xf32>
      %cst_52 = arith.constant 3.125000e-02 : f32
      %215 = vector.broadcast %cst_52 : f32 to vector<16x1xf32>
      %216 = arith.mulf %214, %215 : vector<16x1xf32>
      %217 = arith.mulf %210, %210 : vector<16x256xf32>
      %cst_53 = arith.constant dense<0.000000e+00> : vector<16xf32>
      %218 = vector.multi_reduction <add>, %217, %cst_53 [1] : vector<16x256xf32> to vector<16xf32>
      %219 = vector.shape_cast %218 : vector<16xf32> to vector<16x1xf32>
      %cst_54 = arith.constant 3.125000e-02 : f32
      %220 = vector.broadcast %cst_54 : f32 to vector<16x1xf32>
      %221 = arith.mulf %219, %220 : vector<16x1xf32>
      %222 = arith.mulf %216, %216 : vector<16x1xf32>
      %223 = arith.subf %221, %222 : vector<16x1xf32>
      %cst_55 = arith.constant 0.000000e+00 : f32
      %224 = vector.broadcast %cst_55 : f32 to vector<16x1xf32>
      %225 = arith.maximumf %223, %224 : vector<16x1xf32>
      %226 = vector.broadcast %216 : vector<16x1xf32> to vector<16x256xf32>
      %227 = arith.subf %210, %226 : vector<16x256xf32>
      %cst_56 = arith.constant 9.99999974E-6 : f32
      %228 = vector.broadcast %cst_56 : f32 to vector<16x1xf32>
      %229 = arith.addf %225, %228 : vector<16x1xf32>
      %230 = math.rsqrt %229 : vector<16x1xf32>
      %231 = vector.broadcast %230 : vector<16x1xf32> to vector<16x256xf32>
      %232 = arith.mulf %227, %231 : vector<16x256xf32>
      %233 = vector.broadcast %211 : vector<1x256xf32> to vector<16x256xf32>
      %234 = arith.mulf %232, %233 : vector<16x256xf32>
      %235 = vector.broadcast %212 : vector<1x256xf32> to vector<16x256xf32>
      %236 = arith.addf %234, %235 : vector<16x256xf32>
      %237 = arith.truncf %236 : vector<16x256xf32> to vector<16x256xbf16>
      %c0_57 = arith.constant 0 : index
      %c0_58 = arith.constant 0 : index
      %238 = vector.load %arg10[%c0_57, %c0_58] : memref<256x128xbf16, #tpu.memory_space<vmem>>, vector<256x128xbf16>
      %cst_59 = arith.constant dense<0.000000e+00> : vector<16x128xf32>
      %239 = tpu.matmul %237, %238, %cst_59 {dimension_numbers = #tpu.dot_dimension_numbers<[1], [0], [0], [1], [0, 0, 1, 1], [], []>} : vector<16x256xbf16>, vector<256x128xbf16>, vector<16x128xf32> -> vector<16x128xf32>
      %c0_60 = arith.constant 0 : index
      %c0_61 = arith.constant 0 : index
      %240 = vector.load %arg11[%c0_60, %c0_61] : memref<1x128xf32, #tpu.memory_space<vmem>>, vector<1x128xf32>
      %241 = vector.broadcast %240 : vector<1x128xf32> to vector<16x128xf32>
      %242 = arith.addf %239, %241 : vector<16x128xf32>
      %cst_62 = arith.constant 0.000000e+00 : f32
      %243 = vector.broadcast %cst_62 : f32 to vector<16x128xf32>
      %244 = arith.maximumf %242, %243 : vector<16x128xf32>
      %245 = arith.truncf %244 : vector<16x128xf32> to vector<16x128xbf16>
      %c0_63 = arith.constant 0 : index
      %c0_64 = arith.constant 0 : index
      %246 = vector.load %arg12[%c0_63, %c0_64] : memref<128x128xbf16, #tpu.memory_space<vmem>>, vector<128x128xbf16>
      %cst_65 = arith.constant dense<0.000000e+00> : vector<16x128xf32>
      %247 = tpu.matmul %245, %246, %cst_65 {dimension_numbers = #tpu.dot_dimension_numbers<[1], [0], [0], [1], [0, 0, 1, 1], [], []>} : vector<16x128xbf16>, vector<128x128xbf16>, vector<16x128xf32> -> vector<16x128xf32>
      %c0_66 = arith.constant 0 : index
      %c0_67 = arith.constant 0 : index
      %248 = vector.load %arg13[%c0_66, %c0_67] : memref<1x128xf32, #tpu.memory_space<vmem>>, vector<1x128xf32>
      %249 = vector.broadcast %248 : vector<1x128xf32> to vector<16x128xf32>
      %250 = arith.addf %247, %249 : vector<16x128xf32>
      %c0_68 = arith.constant 0 : index
      %c0_69 = arith.constant 0 : index
      %c0_70 = arith.constant 0 : index
      %251 = vector.load %arg14[%c0_68, %c0_69, %c0_70] : memref<1x16x128xf32, #tpu.memory_space<vmem>>, vector<1x16x128xf32>
      %252 = vector.shape_cast %251 : vector<1x16x128xf32> to vector<16x128xf32>
      %253 = vector.shape_cast %250 : vector<16x128xf32> to vector<1x16x128xf32>
      tpu.vector_store %arg14[%c0_68, %c0_69, %c0_70], %253 {strides = array<i32>} : memref<1x16x128xf32, #tpu.memory_space<vmem>>, vector<1x16x128xf32>,
    } else {
    }
    return
  }
  func.func @transform_0(%arg0: i32, %arg1: i32) -> (i32, i32, i32) {
    %c0_i32 = arith.constant 0 : i32
    %c0_i32_0 = arith.constant 0 : i32
    %c0_i32_1 = arith.constant 0 : i32
    return %arg0, %c0_i32, %c0_i32_0 : i32, i32, i32
  }
  func.func @transform_1(%arg0: i32, %arg1: i32) -> (i32, i32, i32) {
    %c0_i32 = arith.constant 0 : i32
    %c0_i32_0 = arith.constant 0 : i32
    %c0_i32_1 = arith.constant 0 : i32
    return %arg1, %c0_i32, %c0_i32_0 : i32, i32, i32
  }
  func.func @transform_2(%arg0: i32, %arg1: i32) -> (i32, i32, i32) {
    %c0_i32 = arith.constant 0 : i32
    %c0_i32_0 = arith.constant 0 : i32
    %c0_i32_1 = arith.constant 0 : i32
    return %arg1, %c0_i32, %c0_i32_0 : i32, i32, i32
  }
  func.func @transform_3(%arg0: i32, %arg1: i32) -> (i32, i32, i32) {
    %c0_i32 = arith.constant 0 : i32
    %c0_i32_0 = arith.constant 0 : i32
    %c0_i32_1 = arith.constant 0 : i32
    return %arg1, %c0_i32, %c0_i32_0 : i32, i32, i32
  }
  func.func @transform_4(%arg0: i32, %arg1: i32) -> (i32, i32, i32) {
    %c0_i32 = arith.constant 0 : i32
    %c0_i32_0 = arith.constant 0 : i32
    %c0_i32_1 = arith.constant 0 : i32
    return %arg1, %c0_i32, %c0_i32_0 : i32, i32, i32
  }
  func.func @transform_5(%arg0: i32, %arg1: i32) -> (i32, i32, i32) {
    %c0_i32 = arith.constant 0 : i32
    %c0_i32_0 = arith.constant 0 : i32
    %c0_i32_1 = arith.constant 0 : i32
    return %arg1, %c0_i32, %c0_i32_0 : i32, i32, i32
  }
  func.func @transform_6(%arg0: i32, %arg1: i32) -> (i32, i32) {
    %c0_i32 = arith.constant 0 : i32
    %c0_i32_0 = arith.constant 0 : i32
    %c0_i32_1 = arith.constant 0 : i32
    return %c0_i32, %c0_i32_0 : i32, i32
  }
  func.func @transform_7(%arg0: i32, %arg1: i32) -> (i32, i32) {
    %c0_i32 = arith.constant 0 : i32
    %c0_i32_0 = arith.constant 0 : i32
    %c0_i32_1 = arith.constant 0 : i32
    return %c0_i32, %c0_i32_0 : i32, i32
  }
  func.func @transform_8(%arg0: i32, %arg1: i32) -> (i32, i32) {
    %c0_i32 = arith.constant 0 : i32
    %c0_i32_0 = arith.constant 0 : i32
    %c0_i32_1 = arith.constant 0 : i32
    return %c0_i32, %c0_i32_0 : i32, i32
  }
  func.func @transform_9(%arg0: i32, %arg1: i32) -> (i32, i32) {
    %c0_i32 = arith.constant 0 : i32
    %c0_i32_0 = arith.constant 0 : i32
    %c0_i32_1 = arith.constant 0 : i32
    return %c0_i32, %c0_i32_0 : i32, i32
  }
  func.func @transform_10(%arg0: i32, %arg1: i32) -> (i32, i32) {
    %c0_i32 = arith.constant 0 : i32
    %c0_i32_0 = arith.constant 0 : i32
    %c0_i32_1 = arith.constant 0 : i32
    return %c0_i32, %c0_i32_0 : i32, i32
  }
  func.func @transform_11(%arg0: i32, %arg1: i32) -> (i32, i32) {
    %c0_i32 = arith.constant 0 : i32
    %c0_i32_0 = arith.constant 0 : i32
    %c0_i32_1 = arith.constant 0 : i32
    return %c0_i32, %c0_i32_0 : i32, i32
  }
  func.func @transform_12(%arg0: i32, %arg1: i32) -> (i32, i32, i32) {
    %c0_i32 = arith.constant 0 : i32
    %c0_i32_0 = arith.constant 0 : i32
    %c0_i32_1 = arith.constant 0 : i32
    return %arg0, %c0_i32, %c0_i32_0 : i32, i32, i32
  }
}

</mosaic_0001>

<bundles_post_ra>
// kernel: tpu_custom_call.1
= control target key start
LH: loop header
LB: loop body
LE: loop exit
PB: predicated region body
PF: predicated region fallthrough
CT: control target
= control target key end

     0   :  { %s2909_s0 = inlined_call_operand.hbm [shape: f32[1,16,256], index: 0, kind: input, shape index: {}]   ;;  %s2910_s1 = inlined_call_operand.hbm [shape: f32[2,1,256], index: 1, kind: input, shape index: {}]   ;;  %s2911_s2 = inlined_call_operand.vmem [shape: f32[2,1,256], index: 2, kind: input, shape index: {}]   ;;  %s2912_s3 = inlined_call_operand.hbm [shape: bf16[2,256,256], index: 3, kind: input, shape index: {}]   ;;  %s2913_s4 = inlined_call_operand.hbm [shape: f32[2,1,256], index: 4, kind: input, shape index: {}]   ;;  %s2914_s5 = inlined_call_operand.vmem [shape: f32[2,4,128], index: 5, kind: input, shape index: {}]   ;;  %s2915_s6 = inlined_call_operand.vmem [shape: f32[1,256], index: 6, kind: input, shape index: {}]   ;;  %s2916_s7 = inlined_call_operand.vmem [shape: f32[1,256], index: 7, kind: input, shape index: {}]   ;;  %s2917_s8 = inlined_call_operand.hbm [shape: bf16[256,128], index: 8, kind: input, shape index: {}]   ;;  %s2918_s9 = inlined_call_operand.vmem [shape: f32[1,128], index: 9, kind: input, shape index: {}]   ;;  %s2919_s10 = inlined_call_operand.hbm [shape: bf16[128,128], index: 10, kind: input, shape index: {}]   ;;  %s2920_s11 = inlined_call_operand.vmem [shape: f32[1,128], index: 11, kind: input, shape index: {}]   ;;  %s2921_s12 = inlined_call_operand.hbm [shape: f32[1,16,128], index: 12, kind: output, shape index: {}]  }
   0x1   :  { %2947 = sst [smem:[#allocation29_spill]] %s2910_s1 }
   0x2   :  { %2948 = sst [smem:[#allocation30_spill]] %s2911_s2 }
   0x3   :  { %2949 = sst [smem:[#allocation31_spill]] %s2914_s5 }
   0x4   :  { %2950 = sst [smem:[#allocation32_spill]] %s2915_s6 }
   0x5   :  { %2951 = sst [smem:[#allocation33_spill]] %s2916_s7 }
   0x6   :  { %2952 = sst [smem:[#allocation34_spill]] %s2917_s8 }
   0x7   :  { %2953 = sst [smem:[#allocation35_spill]] %s2918_s9 }
   0x8   :  { %2954 = sst [smem:[#allocation36_spill]] %s2920_s11 }
   0x9   :  { %2955 = sst [smem:[#allocation37_spill]] %s2921_s12 }
   0xa   :  { %17 = vsyncpa [#allocation5], 0 }
   0xb   :  { %18 = vsyncpa [#allocation8], 0 }
   0xc   :  { %20 = vsyncpa [#allocation8 + $0x1], 0 }
   0xd   :  { %21 = vsyncpa [#allocation11], 0 }
   0xe   :  { %23 = vsyncpa [#allocation11 + $0x1], 0 }
   0xf   :  { %24 = vsyncpa [#allocation14], 0 }
  0x10   :  { %25 = vsyncpa [#allocation6], 0  ;;  %s2385_s21 = smov 0   ;;  %s2387_s22 = smov 0  }
  0x11   :  { %s2389_s23 = smov 0   ;;  %s2391_s24 = smov 0  }
  0x12   :  { %s2393_s25 = smov 0   ;;  %s2395_s26 = smov 0  }
  0x13 LB: > { %2956 = sst [smem:[#allocation22_spill]] %s2285_s22  ;;  %s2414_s27 = sadd.s32 4294967295, %s2301_s26   ;;  %s2301_s26 = sphi %s2395_s26, %s31_s26   ;;  %s2297_s25 = sphi %s2393_s25, %s3007_s25   ;;  %s2293_s24 = sphi %s2391_s24, %s3006_s24   ;;  %s2289_s23 = sphi %s2389_s23, %s3004_s23   ;;  %s2285_s22 = sphi %s2387_s22, %s3003_s22   ;;  %s2281_s21 = sphi %s2385_s21, %s3002_s21  }
  0x14   : > { %2957 = sst [smem:[#allocation23_spill]] %s2289_s23  ;;  %p89_p0 = scmp.ne.s32.totalorder %s2285_s22, %s2281_s21 }
  0x15   : > { %2958 = sst [smem:[#allocation24_spill]] %s2293_s24  ;;  %p2923_p1 = scmp.eq.s32.totalorder %s2414_s27, 0 }
  0x16   : > { %2959 = sst [smem:[#allocation25_spill]] %s2414_s27  ;;  %p1697_p2 = scmp.ge.s32.totalorder %s2301_s26, 1 }
  0x17   : > { %p356_p3 = scmp.lt.s32.totalorder %s2301_s26, 3  ;;  %p2422_p4 = por %p2923_p1, %p89_p0 }
  0x18   : > { %s2303_s30 = smov [#allocation12]   ;;  %s40_s15 = sadd.s32 1, %s2297_s25 }
  0x19   : > { %s2960_s28 = scalar_select %p2422_p4, 1, 0 }
  0x1a   : > { %p2426_p5 = pnand %p1697_p2, %p356_p3  ;;  %s390_s13 = sshll.u32 %s2303_s30, 4  ;;  %s391_s13 = int_to_ptr.vmem [resolvable:$true] %s390_s13 }
  0x1b   : > { %2961 = sst [smem:[#allocation26_spill]] %s2960_s28  ;;  %s2964_s8 = sld [smem:[#allocation34_spill]] }
  0x1c   : > { %s2962_s29 = scalar_select %p2426_p5, 1, 0 }
  0x1d   : > { %p1860_p6 = pneg %p2426_p5 }
  0x1f   : > { %p2434_p7 = pnand %p1860_p6, %p2923_p1 }
  0x21   : > { %s2963_s14 = scalar_select %p2434_p7, 1, 0 }
  0x22   : > { %s2031_s18 = scalar_lea.hbm %s2964_s8, 2048  ;;  %p2447_p9 = pneg %p2434_p7 }
  0x23   : > { %p2032_p8 = scmp.ne.s32.totalorder %s2964_s8, %s2031_s18  ;;  %p2038_p12 = scmp.lt.u32.totalorder %s2031_s18, %s2964_s8 }
  0x24   : > { %s2965_s21 = scalar_select %p2447_p9, 1, 0 }
  0x25   : > { %p2034_p10 = pnand %p2447_p9, %p2032_p8 }
  0x27   : > { %p2035_p11 = pneg %p2034_p10 }
  0x29   : > { %p2040_p13 = pnand %p2038_p12, %p2035_p11 }
  0x2b   : > { %2043 = shalt.err (!%p2040_p13)
}
  0x2c   : > { %s2044_s16 = scalar_lea.vmem %s391_s13, 2048  ;;  %p2052_p6 = scmp.lt.s32.totalorder %s391_s13, %s391_s13 }
  0x2d   : > { %p2045_p0 = scmp.ne.s32.totalorder %s391_s13, %s2044_s16  ;;  %p2053_p1 = scmp.lt.s32.totalorder %s2044_s16, %s2044_s16 }
  0x2f   : > { %p2047_p2 = pnand %p2045_p0, %p2447_p9  ;;  %p2054_p4 = por %p2053_p1, %p2052_p6 }
  0x31   : > { %p2048_p3 = pneg %p2047_p2 }
  0x33   : > { %p2055_p5 = pnand %p2054_p4, %p2048_p3 }
  0x35   : > { %2058 = shalt.err (!%p2055_p5)
}
  0x36   : > { %s2926_s17 = smov 64   ;;  %s2927_s12 = smov 4  }
  0x37   : > { %1866 = dma.hbm_to_vmem [thread:$0]  (!%p2434_p7), %s2964_s8, 2048, %s391_s13, [#allocation11], %s2926_s17, %s2926_s17, %s2927_s12  }
  0x38   : > { %p41_p1 = scmp.ge.s32.totalorder %s40_s15, 2  ;;  %s76_s20 = sadd.s32 1, %s2289_s23 }
  0x39   : > { %p83_p4 = scmp.ne.s32.totalorder %s2289_s23, %s2285_s22  ;;  %p84_p5 = scmp.eq.s32.totalorder %s2301_s26, 0 }
  0x3a   : > { %s3009_s15 = smov (%p41_p1, %s40_s15), 0  ;;  %p1883_p10 = scmp.lt.s32.totalorder %s2301_s26, 2 }
  0x3b   : > { %2966 = sst [smem:[#allocation27_spill]] %s3009_s15  ;;  %p85_p8 = por %p84_p5, %p83_p4 }
  0x3c   : > { %s73_s30 = ssub.s32 %s2297_s25, %s3009_s15  ;;  %s425_s11 = sand.u32 1, %s2289_s23  }
  0x3d   : > { %p74_p11 = scmp.eq.s32.totalorder %s73_s30, 0  ;;  %s2928_s9 = sshll.u32 %s2297_s25, 5 }
  0x3e   : > { %s2481_s18 = sshll.u32 %s425_s11, 1  ;;  %s2968_s1 = sld [smem:[#allocation29_spill]] }
  0x3f   : > { %s2479_s7 = scalar_select %p74_p11, %s2289_s23, %s76_s20  }
  0x40   : > { %p2490_p12 = pnand %p1883_p10, %p85_p8  ;;  %s427_s20 = scalar_lea.vmem [#allocation7], %s2481_s18 }
  0x41   : > { %2967 = sst [smem:[#allocation28_spill]] %s2479_s7  ;;  %s435_s30 = sshll.u32 %s427_s20, 4  ;;  %s2497_s30 = int_to_ptr.vmem [resolvable:$true] %s435_s30 }
  0x42   : > { %s2969_s12 = scalar_select %p2490_p12, 1, 0 }
  0x43   : > { %s2495_s16 = sshll.u32 %s425_s11, 8  ;;  %s2970_s8 = sand.u32 1, %s2301_s26  }
  0x44   : > { %s2488_s17 = scalar_lea.hbm %s2968_s1, %s2928_s9  ;;  %s2501_s13 = scalar_lea.sflag [#allocation8], %s2970_s8 }
  0x45   : > { %s2059_s19 = scalar_lea.hbm %s2488_s17, 32  ;;  %p2507_p0 = pneg %p2490_p12 }
  0x46   : > { %p2060_p13 = scmp.ne.s32.totalorder %s2488_s17, %s2059_s19  ;;  %s2064_s11 = scalar_lea.hbm %s2968_s1, 64 }
  0x47   : > { %s2971_s9 = scalar_select %p2507_p0, 1, 0 }
  0x48   : > { %p2062_p2 = pnand %p2507_p0, %p2060_p13  ;;  %p2065_p6 = scmp.lt.u32.totalorder %s2488_s17, %s2968_s1 }
  0x49   : > { %p2066_p1 = scmp.lt.u32.totalorder %s2064_s11, %s2059_s19  ;;  %p2068_p5 = scmp.lt.u32.totalorder %s2059_s19, %s2488_s17 }
  0x4a   : > { %p2063_p3 = pneg %p2062_p2 }
  0x4b   : > { %p2067_p4 = por %p2066_p1, %p2065_p6 }
  0x4d   : > { %p2069_p8 = por %p2068_p5, %p2067_p4 }
  0x4f   : > { %p2070_p10 = pnand %p2069_p8, %p2063_p3 }
  0x51   : > { %2073 = shalt.err (!%p2070_p10)
}
  0x52   : > { %s2074_s8 = scalar_lea.vmem %s2497_s30, 32  ;;  %s2306_s15 = smov [#allocation7]  }
  0x53   : > { %p2075_p11 = scmp.ne.s32.totalorder %s2497_s30, %s2074_s8  ;;  %s2079_s20 = sshll.u32 %s2306_s15, 4  ;;  %s2080_s20 = int_to_ptr.vmem [resolvable:$false] %s2079_s20 }
  0x54   : > { %s2081_s7 = scalar_lea.vmem %s2080_s20, 64  ;;  %p2082_p7 = scmp.lt.s32.totalorder %s2497_s30, %s2080_s20 }
  0x55   : > { %p2077_p13 = pnand %p2075_p11, %p2507_p0  ;;  %p2083_p9 = scmp.lt.s32.totalorder %s2081_s7, %s2074_s8 }
  0x57   : > { %p2078_p2 = pneg %p2077_p13  ;;  %p2084_p6 = por %p2083_p9, %p2082_p7 }
  0x59   : > { %p2085_p1 = pnand %p2084_p6, %p2078_p2 }
  0x5b   : > { %2088 = shalt.err (!%p2085_p1)
}
  0x5c   : > { %1873 = dma.hbm_to_vmem [thread:$0]  (!%p2490_p12), %s2488_s17, 32, %s2497_s30, %s2501_s13  }
  0x5d   : > { %s453_s23 = scalar_lea.vmem [#allocation9], %s2495_s16  ;;  %s2972_s11 = sshll.u32 %s2297_s25, 5 }
  0x5e   : > { %s460_s19 = sshll.u32 %s453_s23, 4  ;;  %s2539_s8 = scalar_lea.hbm %s2913_s4, %s2972_s11  ;;  %s2532_s19 = int_to_ptr.vmem [resolvable:$true] %s460_s19 }
  0x5f   : > { %s2307_s7 = smov [#allocation4]   ;;  %s2089_s2 = scalar_lea.hbm %s2909_s0, 512 }
  0x60   : > { %s371_s1 = sshll.u32 %s2307_s7, 4  ;;  %p2090_p7 = scmp.ne.s32.totalorder %s2909_s0, %s2089_s2  ;;  %s372_s1 = int_to_ptr.vmem [resolvable:$true] %s371_s1 }
  0x61   : > { %p2973_p9 = scmp.ne.s32.totalorder %s2965_s21, 0  ;;  %p2096_p5 = scmp.lt.u32.totalorder %s2089_s2, %s2909_s0 }
  0x63   : > { %p2092_p3 = pnand %p2090_p7, %p2973_p9 }
  0x65   : > { %p2093_p4 = pneg %p2092_p3 }
  0x67   : > { %p2098_p8 = pnand %p2096_p5, %p2093_p4 }
  0x69   : > { %2101 = shalt.err (!%p2098_p8)
}
  0x6a   : > { %s2102_s30 = scalar_lea.vmem %s372_s1, 512  ;;  %p2110_p2 = scmp.lt.s32.totalorder %s372_s1, %s372_s1 }
  0x6b   : > { %p2103_p10 = scmp.ne.s32.totalorder %s372_s1, %s2102_s30  ;;  %p2111_p6 = scmp.lt.s32.totalorder %s2102_s30, %s2102_s30 }
  0x6d   : > { %p2105_p11 = pnand %p2103_p10, %p2973_p9  ;;  %p2112_p1 = por %p2111_p6, %p2110_p2 }
  0x6f   : > { %p2106_p13 = pneg %p2105_p11 }
  0x71   : > { %p2113_p12 = pnand %p2112_p1, %p2106_p13 }
  0x73   : > { %2116 = shalt.err (!%p2113_p12)
}
  0x74   : > { %s2308_s5 = smov 256   ;;  %s2309_s6 = smov 16  }
  0x75   : > { %p2974_p7 = scmp.ne.s32.totalorder %s2963_s14, 0  ;;  %s2310_s28 = smov [#allocation13]  }
  0x76   : > { %s406_s23 = sshll.u32 %s2310_s28, 4  ;;  %s1785_s11 = sshll.u32 %s2297_s25, 12  ;;  %s407_s23 = int_to_ptr.vmem [resolvable:$true] %s406_s23 }
  0x77   : > { %1863 = dma.hbm_to_vmem [thread:$0]  (!%p2974_p7), %s2909_s0, 512, %s372_s1, [#allocation5], %s2308_s5, %s2308_s5, %s2309_s6  }
  0x78   : > { %s2563_s7 = scalar_lea.hbm %s2912_s3, %s1785_s11  ;;  %s2117_s30 = scalar_lea.hbm %s2919_s10, 1024 }
  0x79   : > { %p2118_p12 = scmp.ne.s32.totalorder %s2919_s10, %s2117_s30  ;;  %p2124_p5 = scmp.lt.u32.totalorder %s2117_s30, %s2919_s10 }
  0x7b   : > { %p2120_p3 = pnand %p2118_p12, %p2973_p9 }
  0x7d   : > { %p2121_p4 = pneg %p2120_p3 }
  0x7f   : > { %p2126_p8 = pnand %p2124_p5, %p2121_p4 }
  0x81   : > { %2129 = shalt.err (!%p2126_p8)
}
  0x82   : > { %s2130_s6 = scalar_lea.vmem %s407_s23, 1024  ;;  %p2138_p2 = scmp.lt.s32.totalorder %s407_s23, %s407_s23 }
  0x83   : > { %p2131_p10 = scmp.ne.s32.totalorder %s407_s23, %s2130_s6  ;;  %p2139_p6 = scmp.lt.s32.totalorder %s2130_s6, %s2130_s6 }
  0x85   : > { %p2133_p11 = pnand %p2131_p10, %p2973_p9  ;;  %p2140_p1 = por %p2139_p6, %p2138_p2 }
  0x87   : > { %p2134_p13 = pneg %p2133_p11 }
  0x89   : > { %p2141_p0 = pnand %p2140_p1, %p2134_p13 }
  0x8b   : > { %2144 = shalt.err (!%p2141_p0)
}
  0x8c   : > { %s2975_s22 = smov 4   ;;  %s2976_s27 = smov 64  }
  0x8d   : > { %1869 = dma.hbm_to_vmem [thread:$0]  (!%p2974_p7), %s2919_s10, 1024, %s407_s23, [#allocation14], %s2976_s27, %s2976_s27, %s2975_s22  }
  0x8e   : > { %s2145_s21 = scalar_lea.hbm %s2563_s7, 4096  ;;  %p2977_p12 = scmp.ne.s32.totalorder %s2971_s9, 0 }
  0x8f   : > { %p2146_p9 = scmp.ne.s32.totalorder %s2563_s7, %s2145_s21  ;;  %s2150_s14 = scalar_lea.hbm %s2912_s3, 8192 }
  0x90   : > { %p2151_p0 = scmp.lt.u32.totalorder %s2563_s7, %s2912_s3  ;;  %p2152_p5 = scmp.lt.u32.totalorder %s2150_s14, %s2145_s21 }
  0x91   : > { %p2148_p3 = pnand %p2146_p9, %p2977_p12  ;;  %p2154_p10 = scmp.lt.u32.totalorder %s2145_s21, %s2563_s7 }
  0x92   : > { %p2153_p8 = por %p2152_p5, %p2151_p0 }
  0x93   : > { %p2149_p4 = pneg %p2148_p3 }
  0x94   : > { %p2155_p11 = por %p2154_p10, %p2153_p8 }
  0x96   : > { %p2156_p13 = pnand %p2155_p11, %p2149_p4 }
  0x98   : > { %2159 = shalt.err (!%p2156_p13)
}
  0x99   : > { %s2160_s23 = scalar_lea.vmem %s2532_s19, 4096  ;;  %s2311_s17 = smov [#allocation9]  }
  0x9a   : > { %p2161_p7 = scmp.ne.s32.totalorder %s2532_s19, %s2160_s23  ;;  %s2165_s16 = sshll.u32 %s2311_s17, 4  ;;  %s2166_s16 = int_to_ptr.vmem [resolvable:$false] %s2165_s16 }
  0x9b   : > { %s2167_s30 = scalar_lea.vmem %s2166_s16, 8192  ;;  %p2168_p1 = scmp.lt.s32.totalorder %s2532_s19, %s2166_s16 }
  0x9c   : > { %p2163_p2 = pnand %p2161_p7, %p2977_p12  ;;  %p2169_p9 = scmp.lt.s32.totalorder %s2167_s30, %s2160_s23 }
  0x9e   : > { %p2164_p6 = pneg %p2163_p2  ;;  %p2170_p3 = por %p2169_p9, %p2168_p1 }
  0xa0   : > { %p2171_p0 = pnand %p2170_p3, %p2164_p6 }
  0xa2   : > { %2174 = shalt.err (!%p2171_p0)
}
  0xa3   : > { %s2312_s1 = smov 128   ;;  %s2313_s5 = smov 8  }
  0xa4   : > { %p2978_p4 = scmp.ne.s32.totalorder %s2969_s12, 0  ;;  %s474_s6 = scalar_lea.vmem [#allocation10], %s2481_s18 }
  0xa5   : > { %s482_s22 = sshll.u32 %s474_s6, 4  ;;  %s2979_s27 = sand.u32 1, %s2301_s26   ;;  %s483_s22 = int_to_ptr.vmem [resolvable:$true] %s482_s22 }
  0xa6   : > { %1876 = dma.hbm_to_vmem [thread:$0]  (!%p2978_p4), %s2563_s7, 4096, %s2532_s19, %s2501_s13, %s2312_s1, %s2312_s1, %s2313_s5  }
  0xa7   : > { %s471_s2 = scalar_lea.sflag [#allocation11], %s2979_s27  ;;  %s2175_s24 = scalar_lea.hbm %s2539_s8, 32 }
  0xa8   : > { %p2176_p5 = scmp.ne.s32.totalorder %s2539_s8, %s2175_s24  ;;  %s2180_s11 = scalar_lea.hbm %s2913_s4, 64 }
  0xa9   : > { %p2181_p11 = scmp.lt.u32.totalorder %s2539_s8, %s2913_s4  ;;  %p2182_p13 = scmp.lt.u32.totalorder %s2180_s11, %s2175_s24 }
  0xaa   : > { %p2178_p8 = pnand %p2176_p5, %p2977_p12  ;;  %p2184_p2 = scmp.lt.u32.totalorder %s2175_s24, %s2539_s8 }
  0xab   : > { %p2183_p7 = por %p2182_p13, %p2181_p11 }
  0xac   : > { %p2179_p10 = pneg %p2178_p8 }
  0xad   : > { %p2185_p6 = por %p2184_p2, %p2183_p7 }
  0xaf   : > { %p2186_p1 = pnand %p2185_p6, %p2179_p10 }
  0xb1   : > { %2189 = shalt.err (!%p2186_p1)
}
  0xb2   : > { %s2190_s18 = scalar_lea.vmem %s483_s22, 32  ;;  %s2314_s13 = smov [#allocation10]  }
  0xb3   : > { %p2191_p9 = scmp.ne.s32.totalorder %s483_s22, %s2190_s18  ;;  %s2195_s19 = sshll.u32 %s2314_s13, 4  ;;  %s2196_s19 = int_to_ptr.vmem [resolvable:$false] %s2195_s19 }
  0xb4   : > { %s2197_s7 = scalar_lea.vmem %s2196_s19, 64  ;;  %p2198_p5 = scmp.lt.s32.totalorder %s483_s22, %s2196_s19 }
  0xb5   : > { %p2193_p3 = pnand %p2191_p9, %p2977_p12  ;;  %p2199_p8 = scmp.lt.s32.totalorder %s2197_s7, %s2190_s18 }
  0xb7   : > { %p2194_p0 = pneg %p2193_p3  ;;  %p2200_p4 = por %p2199_p8, %p2198_p5 }
  0xb9   : > { %p2201_p11 = pnand %p2200_p4, %p2194_p0 }
  0xbb   : > { %2204 = shalt.err (!%p2201_p11)
}
  0xbc   : > { %p2980_p13 = scmp.ne.s32.totalorder %s2969_s12, 0  ;;  %p2981_p10 = scmp.ne.s32.totalorder %s2962_s29, 0 }
  0xbd   : > { %s2982_s20 = sld [smem:[#allocation25_spill]] (!%p2981_p10) }
  0xbe   : > { %1879 = dma.hbm_to_vmem [thread:$0]  (!%p2980_p13), %s2539_s8, 32, %s483_s22, %s471_s2  }
  0xbf   : > { %498 = sbr.rel (%p2981_p10) target bundleno = 1348 (0x544), region = 68 }
  0xc3   : > { %p2983_p7 = scmp.eq.s32.totalorder (!%p2981_p10), %s2982_s20, 0 }
  0xc6   : > { %2256 = dma.done.wait (%p2983_p7), [#allocation5], 512   ;;  %p2984_p12 = pmov %p2983_p7 }
  0xc7   : > { %s2985_s9 = sld [smem:[#allocation22_spill]]  ;;  %s2986_s23 = sld [smem:[#allocation26_spill]] }
  0xc8   : > { %2258 = vsyncadd (%p2984_p12), [#allocation5], 4294966784  ;;  %s504_s17 = sand.u32 1, %s2982_s20  }
  0xc9   : > { %s505_s12 = scalar_lea.sflag [#allocation8], %s504_s17 }
  0xcd   : > { %s506_s16 = sand.u32 1, %s2985_s9   ;;  %p2987_p4 = scmp.ne.s32.totalorder %s2986_s23, 0 }
  0xce   : > { %s2636_s30 = sshll.u32 %s506_s16, 1 }
  0xcf   : > { %s508_s1 = scalar_lea.vmem [#allocation7], %s2636_s30 }
  0xd0   : > { %2260 = dma.done.wait (%p2987_p4), %s505_s12, 4128  }
  0xd1   : > { %2262 = vsyncadd (%p2987_p4), %s505_s12, 4294963168  ;;  %s1714_s29 = sshll.u32 %s506_s16, 8  ;;  %s523_s5 = scalar_lea.sflag [#allocation11], %s504_s17 }
  0xd2   : > { %s2643_s8 = scalar_lea.vmem [#allocation9], %s1714_s29  ;;  %s526_s6 = scalar_lea.vmem [#allocation10], %s2636_s30 }
  0xd3   : > { %2264 = dma.done.wait (%p2987_p4), %s523_s5, 32  }
  0xd4   : > { %2266 = vsyncadd (%p2987_p4), %s523_s5, 4294967264  ;;  %p2988_p2 = pmov %p2983_p7 }
  0xd6   : > { %2268 = dma.done.wait (%p2988_p2), [#allocation11], 2048   ;;  %p2989_p6 = pmov %p2988_p2 }
  0xd7   : > { %p2990_p1 = pmov %p2988_p2 }
  0xd8   : > { %2270 = vsyncadd (%p2989_p6), [#allocation11], 4294965248 }
  0xd9   : > { %2272 = dma.done.wait (%p2990_p1), [#allocation14], 1024   ;;  %p2991_p9 = pmov %p2990_p1 }
  0xda   : > { %s2992_s22 = sld [smem:[#allocation24_spill]]  ;;  %s2993_s11 = sld [smem:[#allocation30_spill]] }
  0xdb   : > { %2274 = vsyncadd (%p2991_p9), [#allocation14], 4294966272  ;;  %s2994_s13 = sld [smem:[#allocation31_spill]] }
  0xe0   : > { %p588_p3 = scmp.lt.s32.totalorder %s2992_s22, 1  ;;  %p1720_p0 = scmp.ne.s32.totalorder %s2992_s22, 0 }
  0xe1   : > { %v601_v0 = vld [vmem:[#allocation4] sm:$0xff] (!%p1720_p0)  ;;  %v602_v1 = vld [vmem:[#allocation4 + $0x8] sm:$0xff] (!%p1720_p0)  ;;  %v603_v2 = vld [vmem:[#allocation4 + $0x10] sm:$0xff] (!%p1720_p0) }
  0xe2   : > { %s589_s27 = scalar_select %p588_p3, %s2992_s22, 1 }
  0xe3   : > { %600 = sbr.rel (%p1720_p0) target bundleno = 234 (0xea), region = 96  ;;  %605 = vst [vmem:[#allocation2] sm:$0xff] (!%p1720_p0), %v601_v0  ;;  %606 = vst [vmem:[#allocation2 + $0x8] sm:$0xff] (!%p1720_p0), %v602_v1  ;;  %v604_v3 = vld [vmem:[#allocation4 + $0x18] sm:$0xff] (!%p1720_p0) }
  0xe4   : > { %s1718_s2 = sshll.u32 %s589_s27, 1  ;;  %s1719_s24 = sshll.u32 %s589_s27, 2  ;;  %607 = vst [vmem:[#allocation2 + $0x10] sm:$0xff] (!%p1720_p0), %v603_v2  ;;  %608 = vst [vmem:[#allocation2 + $0x18] sm:$0xff] (!%p1720_p0), %v604_v3 }
  0xe5   : > { %s2663_s14 = scalar_lea.vmem %s2993_s11, %s1718_s2  ;;  %s2668_s19 = scalar_lea.vmem %s2994_s13, %s1719_s24 }
  0xea PF: > { %v2671_v4 = vld [vmem:[#allocation2] sm:$0xff]  ;;  %v2673_v5 = vld [vmem:[#allocation2 + $0x8] sm:$0xff]  ;;  %v1956_v19 = vld [vmem:[%s2643_s8 + $0x10] ss:$8 sps:$4 sm:$0xff]   ;;  %v654_v62 = vlaneseq  ;;  %s2995_s7 = sld [smem:[#allocation24_spill]]  ;;  %vm1032_vm0 = vcmask 1041408  }
  0xeb   : > { %v2675_v6 = vld [vmem:[#allocation2 + $0x10] sm:$0xff]  ;;  %v615_v7 = vadd.f32 %v2673_v5, %v2671_v4  ;;  %v623_v8 = vmul.f32 %v2671_v4, %v2671_v4  ;;  %v624_v9 = vmul.f32 %v2673_v5, %v2673_v5  ;;  %v2683_v10 = vld [vmem:[#allocation2 + $0x18] sm:$0xff]  ;;  %v1953_v14 = vld [vmem:[%s2643_s8] ss:$8 sps:$4 sm:$0xff]   ;;  %vm1034_vm1 = vcmask 1043456  }
  0xec   : > { %v625_v11 = vmul.f32 %v2675_v6, %v2675_v6  ;;  %v626_v12 = vmul.f32 %v2683_v10, %v2683_v10  ;;  %v1951_v13 = vld [vmem:[%s2643_s8 + $0x4] ss:$8 sps:$4 sm:$0xff]   ;;  %v618_v16 = vadd.f32 %v2683_v10, %v2675_v6  ;;  %v1954_v17 = vld [vmem:[%s2643_s8 + $0x14] ss:$8 sps:$4 sm:$0xff]   ;;  %v1959_v21 = vld [vmem:[%s2643_s8 + $0x20] ss:$8 sps:$4 sm:$0xff]  }
  0xed   : > { %616 = vadd.xlane.f32.xlu0 %v615_v7  ;;  %v627_v15 = vadd.f32 %v624_v9, %v623_v8  ;;  %889 = vmatprep.subr.bf16.mxu0 %v1951_v13  ;;  %v1957_v20 = vld [vmem:[%s2643_s8 + $0x24] ss:$8 sps:$4 sm:$0xff]   ;;  %v1960_v22 = vld [vmem:[%s2643_s8 + $0x34] ss:$8 sps:$4 sm:$0xff]   ;;  %v1962_v23 = vld [vmem:[%s2643_s8 + $0x30] ss:$8 sps:$4 sm:$0xff]  }
  0xee   : > { %v630_v18 = vadd.f32 %v626_v12, %v625_v11  ;;  %890 = vmatpush1.bf16.msra.mxu0 %v1953_v14  ;;  %v1963_v24 = vld [vmem:[%s2643_s8 + $0x44] ss:$8 sps:$4 sm:$0xff]   ;;  %v1965_v25 = vld [vmem:[%s2643_s8 + $0x40] ss:$8 sps:$4 sm:$0xff]   ;;  %v1966_v26 = vld [vmem:[%s2643_s8 + $0x54] ss:$8 sps:$4 sm:$0xff]  }
  0xef   : > { %628 = vadd.xlane.f32.xlu1 %v627_v15  ;;  %891 = vmatprep.subr.bf16.mxu0 %v1954_v17  ;;  %v1968_v27 = vld [vmem:[%s2643_s8 + $0x50] ss:$8 sps:$4 sm:$0xff]   ;;  %v1969_v28 = vld [vmem:[%s2643_s8 + $0x64] ss:$8 sps:$4 sm:$0xff]   ;;  %v1971_v29 = vld [vmem:[%s2643_s8 + $0x60] ss:$8 sps:$4 sm:$0xff]  }
  0xf0   : > { %v1972_v30 = vld [vmem:[%s2643_s8 + $0x74] ss:$8 sps:$4 sm:$0xff]   ;;  %v1974_v31 = vld [vmem:[%s2643_s8 + $0x70] ss:$8 sps:$4 sm:$0xff]   ;;  %v1975_v32 = vld [vmem:[%s2643_s8 + $0x84] ss:$8 sps:$4 sm:$0xff]  }
  0xf1   : > { %619 = vadd.xlane.f32.xlu0 %v618_v16  ;;  %v1977_v33 = vld [vmem:[%s2643_s8 + $0x80] ss:$8 sps:$4 sm:$0xff]   ;;  %v1978_v34 = vld [vmem:[%s2643_s8 + $0x94] ss:$8 sps:$4 sm:$0xff]   ;;  %v1980_v35 = vld [vmem:[%s2643_s8 + $0x90] ss:$8 sps:$4 sm:$0xff]  }
  0xf2   : > { %892 = vmatpush1.bf16.msra.mxu0 %v1956_v19  ;;  %v1981_v36 = vld [vmem:[%s2643_s8 + $0xa4] ss:$8 sps:$4 sm:$0xff]   ;;  %v1983_v37 = vld [vmem:[%s2643_s8 + $0xa0] ss:$8 sps:$4 sm:$0xff]   ;;  %v1984_v38 = vld [vmem:[%s2643_s8 + $0xb4] ss:$8 sps:$4 sm:$0xff]  }
  0xf3   : > { %631 = vadd.xlane.f32.xlu1 %v630_v18  ;;  %893 = vmatprep.subr.bf16.mxu0 %v1957_v20  ;;  %v1986_v39 = vld [vmem:[%s2643_s8 + $0xb0] ss:$8 sps:$4 sm:$0xff]   ;;  %v1987_v40 = vld [vmem:[%s2643_s8 + $0xc4] ss:$8 sps:$4 sm:$0xff]   ;;  %v1989_v41 = vld [vmem:[%s2643_s8 + $0xc0] ss:$8 sps:$4 sm:$0xff]  }
  0xf4   : > { %v1990_v42 = vld [vmem:[%s2643_s8 + $0xd4] ss:$8 sps:$4 sm:$0xff]   ;;  %v1992_v43 = vld [vmem:[%s2643_s8 + $0xd0] ss:$8 sps:$4 sm:$0xff]   ;;  %v1993_v44 = vld [vmem:[%s2643_s8 + $0xe4] ss:$8 sps:$4 sm:$0xff]  }
  0xf5   : > { %v1995_v45 = vld [vmem:[%s2643_s8 + $0xe0] ss:$8 sps:$4 sm:$0xff]   ;;  %v1996_v46 = vld [vmem:[%s2643_s8 + $0xf4] ss:$8 sps:$4 sm:$0xff]   ;;  %v1998_v47 = vld [vmem:[%s2643_s8 + $0xf0] ss:$8 sps:$4 sm:$0xff]  }
  0xf6   : > { %894 = vmatpush1.bf16.msra.mxu0 %v1959_v21  ;;  %v655_v1 = vshrl.u32 %v654_v62, 7  ;;  %v613_v7 = vld [vmem:[%s508_s1] sm:$0x3]  ;;  %p937_p5 = scmp.eq.s32.totalorder %s2995_s7, 1  ;;  %vm1036_vm2 = vcmask 1045504   ;;  %p1753_p8 = scmp.ne.s32.totalorder %s2995_s7, 1 }
  0xf7   : > { %895 = vmatprep.subr.bf16.mxu0 %v1960_v22  ;;  %v614_v12 = vld [vmem:[%s2663_s14] sm:$0x3]  ;;  %s2996_s17 = sld [smem:[#allocation32_spill]] (!%p1753_p8)  ;;  %s2997_s12 = sld [smem:[#allocation33_spill]] (!%p1753_p8)  ;;  %vm2316_vm3 = vmmov (!%p1753_p8), 0  }
  0xf8   : > { %v2723_v2 = vsub.s32 0, %v655_v1  ;;  %v2725_v3 = vsub.s32 1, %v655_v1  ;;  %s938_s20 = scalar_select %p937_p5, 0.0, 1.0 }
  0xf9   : > { %s2998_s8 = sld [smem:[#allocation35_spill]] (!%p1753_p8)  ;;  %s2999_s22 = sld [smem:[#allocation36_spill]] (!%p1753_p8) }
  0xfa   : > { %896 = vmatpush1.bf16.msra.mxu0 %v1962_v23  ;;  %v657_v14 = vrot.slane %v613_v7, %v2723_v2  ;;  %v661_v15 = vrot.slane %v613_v7, %v2725_v3  ;;  %v672_v20 = vrot.slane %v614_v12, %v2723_v2  ;;  %v676_v21 = vrot.slane %v614_v12, %v2725_v3 }
  0xfb   : > { %897 = vmatprep.subr.bf16.mxu0 %v1963_v24 }
  0xfe   : > { %898 = vmatpush1.bf16.msra.mxu0 %v1965_v25 }
  0xff   : > { %899 = vmatprep.subr.bf16.mxu0 %v1966_v26 }
 0x102   : > { %900 = vmatpush1.bf16.msra.mxu0 %v1968_v27 }
 0x103   : > { %901 = vmatprep.subr.bf16.mxu0 %v1969_v28 }
 0x106   : > { %902 = vmatpush1.bf16.msra.mxu0 %v1971_v29 }
 0x107   : > { %903 = vmatprep.subr.bf16.mxu0 %v1972_v30 }
 0x10a   : > { %904 = vmatpush1.bf16.msra.mxu0 %v1974_v31 }
 0x10b   : > { %905 = vmatprep.subr.bf16.mxu0 %v1975_v32 }
 0x10e   : > { %906 = vmatpush1.bf16.msra.mxu0 %v1977_v33 }
 0x10f   : > { %907 = vmatprep.subr.bf16.mxu0 %v1978_v34  ;;  %v936_v34 = vld [vmem:[%s2668_s19] sm:$0xf] }
 0x112   : > { %908 = vmatpush1.bf16.msra.mxu0 %v1980_v35  ;;  %v962_v35 = vsub.s32 2, %v655_v1 }
 0x113   : > { %909 = vmatprep.subr.bf16.mxu0 %v1981_v36  ;;  %v968_v36 = vsub.s32 3, %v655_v1 }
 0x116   : > { %910 = vmatpush1.bf16.msra.mxu0 %v1983_v37  ;;  %v717_v37 = vld [vmem:[%s526_s6] sm:$0x3] }
 0x117   : > { %911 = vmatprep.subr.bf16.mxu0 %v1984_v38  ;;  %v2742_v38 = vrot.slane %v936_v34, %v2723_v2 }
 0x11a   : > { %912 = vmatpush1.bf16.msra.mxu0 %v1986_v39  ;;  %v2744_v39 = vrot.slane %v936_v34, %v962_v35 }
 0x11b   : > { %913 = vmatprep.subr.bf16.mxu0 %v1987_v40  ;;  %v2747_v40 = vrot.slane %v936_v34, %v2725_v3 }
 0x11e   : > { %914 = vmatpush1.bf16.msra.mxu0 %v1989_v41  ;;  %v722_v41 = vrot.slane %v717_v37, %v2723_v2 }
 0x11f   : > { %915 = vmatprep.subr.bf16.mxu0 %v1990_v42  ;;  %v2750_v42 = vrot.slane %v936_v34, %v968_v36  ;;  %v2779_v34 = vstv %s938_s20 }
 0x122   : > { %916 = vmatpush1.bf16.msra.mxu0 %v1992_v43  ;;  %v2753_v43 = vrot.slane %v717_v37, %v2725_v3 }
 0x123   : > { %917 = vmatprep.subr.bf16.mxu0 %v1993_v44  ;;  %v952_v44 = vmul.f32 0.0, %v2742_v38 }
 0x126   : > { %918 = vmatpush1.bf16.msra.mxu0 %v1995_v45 }
 0x127   : > { %919 = vmatprep.subr.bf16.mxu0 %v1996_v46  ;;  %v964_v46 = vmul.f32 0.0, %v2744_v39 }
 0x12a   : > { %920 = vmatpush1.bf16.msra.mxu0 %v1998_v47 }
 0x17a   : > { %v617_v48 = vpop.xlane.xlu0 %616 }
 0x17b   : > { %v621_v49 = vmul.f32 0.03125, %v617_v48  ;;  %v958_v48 = vmul.f32 0.0, %v2747_v40 }
 0x17c   : > { %v629_v50 = vpop.xlane.xlu1 %628 }
 0x17d   : > { %v633_v51 = vmul.f32 0.03125, %v629_v50  ;;  %v635_v52 = vmul.f32 %v621_v49, %v621_v49  ;;  %v641_v9 = vsub.f32 %v2671_v4, %v621_v49  ;;  %v642_v11 = vsub.f32 %v2673_v5, %v621_v49 }
 0x17e   : > { %v620_v53 = vpop.xlane.xlu0 %619 }
 0x17f   : > { %v637_v54 = vsub.f32 %v633_v51, %v635_v52  ;;  %v622_v55 = vmul.f32 0.03125, %v620_v53  ;;  %v970_v51 = vmul.f32 0.0, %v2750_v42 }
 0x180   : > { %v632_v56 = vpop.xlane.xlu1 %631 }
 0x181   : > { %v639_v57 = vmax.f32 %v637_v54, 0.0  ;;  %v634_v58 = vmul.f32 0.03125, %v632_v56  ;;  %v636_v59 = vmul.f32 %v622_v55, %v622_v55  ;;  %v643_v17 = vsub.f32 %v2675_v6, %v622_v55 }
 0x182   : > { %v644_v18 = vsub.f32 %v2683_v10, %v622_v55 }
 0x183   : > { %v645_v60 = vadd.f32 1e-05, %v639_v57  ;;  %v638_v61 = vsub.f32 %v634_v58, %v636_v59 }
 0x185   : > { %1999 = vrsqrt.f32 %v645_v60  ;;  %v640_v63 = vmax.f32 %v638_v61, 0.0 }
 0x187   : > { %v646_v0 = vadd.f32 1e-05, %v640_v63 }
 0x189   : > { %2001 = vrsqrt.f32 %v646_v0 }
 0x18f   : > { %v2000_v8 = vpop.eup %1999 }
 0x190   : > { %v650_v13 = vmul.f32 %v2000_v8, %v642_v11  ;;  %v649_v16 = vmul.f32 %v2000_v8, %v641_v9 }
 0x192   : > { %v665_v23 = vmul.f32 %v661_v15, %v650_v13  ;;  %v664_v25 = vmul.f32 %v657_v14, %v649_v16 }
 0x193   : > { %v2002_v19 = vpop.eup %2001 }
 0x194   : > { %v652_v22 = vmul.f32 %v2002_v19, %v644_v18  ;;  %v651_v24 = vmul.f32 %v2002_v19, %v643_v17  ;;  %v680_v28 = vadd.f32 %v676_v21, %v665_v23  ;;  %v679_v30 = vadd.f32 %v672_v20, %v664_v25 }
 0x196   : > { %v667_v26 = vmul.f32 %v661_v15, %v652_v22  ;;  %v666_v27 = vmul.f32 %v657_v14, %v651_v24 }
 0x198   : > { %v682_v29 = vadd.f32 %v676_v21, %v667_v26  ;;  %v681_v31 = vadd.f32 %v672_v20, %v666_v27 }
 0x19a   : > { %v684_v32 = vpack.c.bf16 %v682_v29, %v680_v28  ;;  %v683_v33 = vpack.c.bf16 %v681_v31, %v679_v30 }
 0x19c   : > { %921 = vmatprep.mubr.bf16.mxu0 %v684_v32 }
 0x19d   : > { %922 = vmatmul.mubr.bf16.vlgmr.msra.gmra.mrb[0].mxu0 %v683_v33 }
 0x270   : > { %v923_v45 = vpop.f32.mrb[0].mxu0 }
 0x271   : > { %v924_v47 = vadd.f32 %v923_v45, %v722_v41  ;;  %v925_v49 = vpop.f32.mrb[1].mxu0 }
 0x272   : > { %v926_v50 = vadd.f32 %v925_v49, %v2753_v43  ;;  %v927_v52 = vpop.f32.mrb[2].mxu0 }
 0x273   : > { %v953_v53 = vadd.f32 %v952_v44, %v924_v47  ;;  %v2760_v54 = vadd.f32 %v927_v52, %v722_v41  ;;  %v929_v55 = vpop.f32.mrb[3].mxu0  ;;  %v1045_v44 = vmul.f32 %v2779_v34, %v2673_v5 }
 0x274   : > { %v965_v56 = vadd.f32 %v964_v46, %v926_v50 }
 0x275   : > { %v959_v57 = vadd.f32 %v958_v48, %v953_v53  ;;  %v1039_v48 = vmul.f32 %v2779_v34, %v2671_v4 }
 0x276   : > { %v971_v58 = vadd.f32 %v970_v51, %v965_v56 }
 0x277   : > { %v972_v59 = vmul.f32 %v959_v57, %v2742_v38  ;;  %v982_v60 = vmul.f32 %v2744_v39, %v959_v57 }
 0x278   : > { %v977_v61 = vmul.f32 %v971_v58, %v2747_v40  ;;  %v987_v62 = vmul.f32 %v971_v58, %v2750_v42 }
 0x279   : > { %v974_v63 = vrot.slane %v972_v59, 6  ;;  %v984_v0 = vrot.slane %v982_v60, 6  ;;  %v930_v59 = vadd.f32 %v929_v55, %v2753_v43 }
 0x27a   : > { %v979_v1 = vrot.slane %v977_v61, 6  ;;  %v989_v7 = vrot.slane %v987_v62, 6 }
 0x27b   : > { %v976_v8 = vadd.f32 %v974_v63, %v924_v47  ;;  %v986_v9 = vadd.f32 %v984_v0, %v926_v50 }
 0x27d   : > { %v981_v11 = vadd.f32 %v979_v1, %v976_v8  ;;  %v991_v12 = vadd.f32 %v989_v7, %v986_v9 }
 0x27f   : > { %v992_v13 = vmul.f32 %v981_v11, %v2742_v38  ;;  %v997_v14 = vmul.f32 %v991_v12, %v2747_v40  ;;  %v1002_v15 = vmul.f32 %v981_v11, %v2744_v39  ;;  %v1007_v16 = vmul.f32 %v991_v12, %v2750_v42 }
 0x280   : > { %v1033_v17 = vsel %vm1032_vm0, %v959_v57, %v981_v11  ;;  %v1042_v18 = vsel %vm1032_vm0, %v971_v58, %v991_v12 }
 0x281   : > { %v994_v19 = vrot.slane %v992_v13, 6  ;;  %v1004_v20 = vrot.slane %v1002_v15, 6  ;;  %v999_v22 = vrot.slane %v997_v14, 6  ;;  %v1009_v24 = vrot.slane %v1007_v16, 6 }
 0x283   : > { %v996_v21 = vadd.f32 %v994_v19, %v924_v47  ;;  %v1006_v23 = vadd.f32 %v1004_v20, %v926_v50 }
 0x285   : > { %v1001_v25 = vadd.f32 %v999_v22, %v996_v21  ;;  %v1011_v26 = vadd.f32 %v1009_v24, %v1006_v23 }
 0x287   : > { %v1022_v27 = vmul.f32 %v1001_v25, %v2744_v39  ;;  %v1027_v28 = vmul.f32 %v1011_v26, %v2750_v42  ;;  %v1035_v29 = vsel %vm1034_vm1, %v1033_v17, %v1001_v25  ;;  %v1017_v30 = vmul.f32 %v1011_v26, %v2747_v40 }
 0x288   : > { %v1043_v31 = vsel %vm1034_vm1, %v1042_v18, %v1011_v26  ;;  %v1012_v32 = vmul.f32 %v1001_v25, %v2742_v38 }
 0x289   : > { %v1024_v33 = vrot.slane %v1022_v27, 6  ;;  %v1029_v37 = vrot.slane %v1027_v28, 6  ;;  %v1019_v41 = vrot.slane %v1017_v30, 6 }
 0x28a   : > { %v1014_v35 = vrot.slane %v1012_v32, 6 }
 0x28b   : > { %v1026_v36 = vadd.f32 %v1024_v33, %v926_v50 }
 0x28c   : > { %v1016_v45 = vadd.f32 %v1014_v35, %v924_v47 }
 0x28d   : > { %v1031_v46 = vadd.f32 %v1029_v37, %v1026_v36 }
 0x28e   : > { %v1021_v49 = vadd.f32 %v1019_v41, %v1016_v45 }
 0x28f   : > { %v1044_v51 = vsel %vm1036_vm2, %v1043_v31, %v1031_v46  ;;  %v1062_v52 = vmul.f32 %v1031_v46, %v2747_v40  ;;  %v1072_v53 = vmul.f32 %v1031_v46, %v2750_v42 }
 0x290   : > { %v1046_v56 = vadd.f32 %v1045_v44, %v1044_v51  ;;  %v1037_v50 = vsel %vm1036_vm2, %v1035_v29, %v1021_v49  ;;  %v1057_v57 = vmul.f32 %v1021_v49, %v2742_v38  ;;  %v1067_v58 = vmul.f32 %v1021_v49, %v2744_v39 }
 0x291   : > { %v1040_v5 = vadd.f32 %v1039_v48, %v1037_v50  ;;  %v1064_v61 = vrot.slane %v1062_v52, 6  ;;  %v1074_v63 = vrot.slane %v1072_v53, 6 }
 0x292   : > { %1047 = vst [vmem:[#allocation2 + $0x8] sm:$0xff] %v1046_v56  ;;  %v1059_v47 = vrot.slane %v1057_v57, 6  ;;  %v1069_v4 = vrot.slane %v1067_v58, 6 }
 0x293   : > { %1041 = vst [vmem:[#allocation2] sm:$0xff] %v1040_v5 }
 0x294   : > { %v1061_v60 = vadd.f32 %v1059_v47, %v2760_v54  ;;  %v1071_v62 = vadd.f32 %v1069_v4, %v930_v59 }
 0x296   : > { %v1066_v0 = vadd.f32 %v1064_v61, %v1061_v60  ;;  %v1076_v1 = vadd.f32 %v1074_v63, %v1071_v62  ;;  %v2003_v62 = vld [vmem:[#allocation12 + $0x40] sm:$0xff] (!%p1753_p8)  }
 0x297   : > { %v2004_v63 = vld [vmem:[#allocation12] sm:$0xff] (!%p1753_p8)   ;;  %1787 = vmatprep.subr.bf16.mxu0 (!%p1753_p8), %v2003_v62 }
 0x298   : > { %v1077_v7 = vmul.f32 %v1066_v0, %v2742_v38  ;;  %v1082_v8 = vmul.f32 %v1076_v1, %v2747_v40  ;;  %v1087_v9 = vmul.f32 %v1066_v0, %v2744_v39  ;;  %v1092_v11 = vmul.f32 %v1076_v1, %v2750_v42  ;;  %1788 = vmatpush3.bf16.msra.mxu0 (!%p1753_p8), %v2004_v63 }
 0x299   : > { %v2821_v57 = vld [vmem:[#allocation2 + $0x8] sm:$0xff] (!%p1753_p8) }
 0x29a   : > { %v1079_v12 = vrot.slane %v1077_v7, 6  ;;  %v1089_v13 = vrot.slane %v1087_v9, 6  ;;  %v1084_v55 = vrot.slane %v1082_v8, 6  ;;  %v1094_v15 = vrot.slane %v1092_v11, 6  ;;  %v2007_v7 = vld [vmem:[#allocation12 + $0x50] sm:$0xff] (!%p1753_p8)   ;;  %v2009_v9 = vld [vmem:[#allocation12 + $0x58] sm:$0xff] (!%p1753_p8)  }
 0x29b   : > { %v1167_v58 = vmul.f32 (!%p1753_p8), %v2821_v57, %v2821_v57  ;;  %v2008_v8 = vld [vmem:[#allocation12 + $0x10] sm:$0xff] (!%p1753_p8)   ;;  %v2010_v11 = vld [vmem:[#allocation12 + $0x18] sm:$0xff] (!%p1753_p8)  }
 0x29c   : > { %v1081_v43 = vadd.f32 %v1079_v12, %v2760_v54  ;;  %v1091_v14 = vadd.f32 %v1089_v13, %v930_v59  ;;  %v2011_v12 = vld [vmem:[#allocation12 + $0x60] sm:$0xff] (!%p1753_p8)  }
 0x29d   : > { %v2012_v13 = vld [vmem:[#allocation12 + $0x20] sm:$0xff] (!%p1753_p8)  }
 0x29e   : > { %v1086_v16 = vadd.f32 %v1084_v55, %v1081_v43  ;;  %v1096_v17 = vadd.f32 %v1094_v15, %v1091_v14  ;;  %v2013_v43 = vld [vmem:[#allocation12 + $0x68] sm:$0xff] (!%p1753_p8)   ;;  %v2015_v14 = vld [vmem:[#allocation12 + $0x70] sm:$0xff] (!%p1753_p8)  }
 0x29f   : > { %v2014_v55 = vld [vmem:[#allocation12 + $0x28] sm:$0xff] (!%p1753_p8)   ;;  %v2016_v15 = vld [vmem:[#allocation12 + $0x30] sm:$0xff] (!%p1753_p8)  }
 0x2a0   : > { %v1097_v18 = vmul.f32 %v1086_v16, %v2742_v38  ;;  %v1102_v19 = vmul.f32 %v1096_v17, %v2747_v40  ;;  %v1107_v20 = vmul.f32 %v1086_v16, %v2744_v39  ;;  %v1112_v21 = vmul.f32 %v1096_v17, %v2750_v42 }
 0x2a1   : > { %v1137_v22 = vsel %vm1032_vm0, %v1066_v0, %v1086_v16  ;;  %v1143_v23 = vsel %vm1032_vm0, %v1076_v1, %v1096_v17  ;;  %v2005_v0 = vld [vmem:[#allocation12 + $0x48] sm:$0xff] (!%p1753_p8)   ;;  %v2017_v16 = vld [vmem:[#allocation12 + $0x78] sm:$0xff] (!%p1753_p8)  }
 0x2a2   : > { %v1099_v24 = vrot.slane %v1097_v18, 6  ;;  %v1109_v25 = vrot.slane %v1107_v20, 6  ;;  %v1104_v27 = vrot.slane %v1102_v19, 6  ;;  %v1114_v29 = vrot.slane %v1112_v21, 6  ;;  %v2006_v1 = vld [vmem:[#allocation12 + $0x8] sm:$0xff] (!%p1753_p8)   ;;  %1789 = vmatprep.subr.bf16.mxu0 (!%p1753_p8), %v2005_v0  ;;  %v2018_v17 = vld [vmem:[#allocation12 + $0x38] sm:$0xff] (!%p1753_p8)  }
 0x2a3   : > { %1790 = vmatpush3.bf16.msra.mxu0 (!%p1753_p8), %v2006_v1  ;;  %v2019_v18 = vld [vmem:[#allocation13] sm:$0xff] (!%p1753_p8)   ;;  %v2315_v19 = vmov (!%p1753_p8), 0.0   ;;  %v2020_v20 = vld [vmem:[#allocation13 + $0x8] sm:$0xff] (!%p1753_p8)   ;;  %v2021_v21 = vld [vmem:[#allocation13 + $0x10] sm:$0xff] (!%p1753_p8)  }
 0x2a4   : > { %v1101_v26 = vadd.f32 %v1099_v24, %v2760_v54  ;;  %v1111_v28 = vadd.f32 %v1109_v25, %v930_v59  ;;  %1791 = vmatprep.subr.bf16.mxu0 (!%p1753_p8), %v2007_v7  ;;  %1818 = vmatprep.subr.bf16.mxu1 (!%p1753_p8), %v2315_v19  ;;  %v1754_v7 = vld [vmem:[%s2998_s8] ss:$0 sm:$0xff] (!%p1753_p8) }
 0x2a5   : > { %1819 = vmatpush3.bf16.msra.mxu1 (!%p1753_p8), %v2019_v18  ;;  %1834 = vmatprep.mubr.msk.bf16.mxu1 (!%p1753_p8), %vm2316_vm3, %v2315_v19 }
 0x2a6   : > { %v1106_v30 = vadd.f32 %v1104_v27, %v1101_v26  ;;  %v1116_v31 = vadd.f32 %v1114_v29, %v1111_v28  ;;  %1820 = vmatprep.subr.bf16.mxu1 (!%p1753_p8), %v2315_v19 }
 0x2a7   : > { %1792 = vmatpush3.bf16.msra.mxu0 (!%p1753_p8), %v2008_v8 }
 0x2a8   : > { %v1117_v32 = vmul.f32 %v1106_v30, %v2742_v38  ;;  %v1122_v33 = vmul.f32 %v1116_v31, %v2747_v40  ;;  %v1127_v35 = vmul.f32 %v1106_v30, %v2744_v39  ;;  %v1132_v36 = vmul.f32 %v1116_v31, %v2750_v42  ;;  %1793 = vmatprep.subr.bf16.mxu0 (!%p1753_p8), %v2009_v9 }
 0x2a9   : > { %v1138_v37 = vsel %vm1034_vm1, %v1137_v22, %v1106_v30  ;;  %v1144_v41 = vsel %vm1034_vm1, %v1143_v23, %v1116_v31  ;;  %v1140_v38 = vmul.f32 %v2779_v34, %v2675_v6  ;;  %v1146_v40 = vmul.f32 %v2779_v34, %v2683_v10  ;;  %1821 = vmatpush3.bf16.msra.mxu1 (!%p1753_p8), %v2020_v20  ;;  %v2022_v22 = vld [vmem:[#allocation13 + $0x18] sm:$0xff] (!%p1753_p8)   ;;  %v2023_v23 = vld [vmem:[#allocation13 + $0x20] sm:$0xff] (!%p1753_p8)  }
 0x2aa   : > { %v1119_v44 = vrot.slane %v1117_v32, 6  ;;  %v1129_v45 = vrot.slane %v1127_v35, 6  ;;  %v1124_v48 = vrot.slane %v1122_v33, 6  ;;  %v1134_v51 = vrot.slane %v1132_v36, 6  ;;  %1822 = vmatprep.subr.bf16.mxu1 (!%p1753_p8), %v2315_v19 }
 0x2ab   : > { %1794 = vmatpush3.bf16.msra.mxu0 (!%p1753_p8), %v2010_v11 }
 0x2ac   : > { %v1121_v46 = vadd.f32 %v1119_v44, %v2760_v54  ;;  %v1131_v49 = vadd.f32 %v1129_v45, %v930_v59  ;;  %v2819_v54 = vld [vmem:[#allocation2] sm:$0xff] (!%p1753_p8)  ;;  %1795 = vmatprep.subr.bf16.mxu0 (!%p1753_p8), %v2011_v12 }
 0x2ad   : > { %1151 = sbr.rel (%p1753_p8) target bundleno = 1313 (0x521), region = 100  ;;  %v1158_v10 = vadd.f32 (!%p1753_p8), %v2821_v57, %v2819_v54  ;;  %v1166_v34 = vmul.f32 (!%p1753_p8), %v2819_v54, %v2819_v54  ;;  %1823 = vmatpush3.bf16.msra.mxu1 (!%p1753_p8), %v2021_v21 }
 0x2ae   : > { %v1126_v39 = vadd.f32 %v1124_v48, %v1121_v46  ;;  %v1136_v52 = vadd.f32 %v1134_v51, %v1131_v49  ;;  %1824 = vmatprep.subr.bf16.mxu1 (!%p1753_p8), %v2315_v19  ;;  %v1156_v46 = vld [vmem:[%s2996_s17] sm:$0x3] (!%p1753_p8) }
 0x2af   : > { %1159 = vadd.xlane.f32.xlu0 (!%p1753_p8), %v1158_v10  ;;  %v1170_v4 = vadd.f32 (!%p1753_p8), %v1167_v58, %v1166_v34  ;;  %1796 = vmatpush3.bf16.msra.mxu0 (!%p1753_p8), %v2012_v13 }
 0x2b0   : > { %v1139_v42 = vsel %vm1036_vm2, %v1138_v37, %v1126_v39  ;;  %v1145_v53 = vsel %vm1036_vm2, %v1144_v41, %v1136_v52  ;;  %1797 = vmatprep.subr.bf16.mxu0 (!%p1753_p8), %v2013_v43  ;;  %v1200_v39 = vrot.slane (!%p1753_p8), %v1156_v46, %v2723_v2  ;;  %v1204_v52 = vrot.slane (!%p1753_p8), %v1156_v46, %v2725_v3 }
 0x2b1   : > { %v1141_v56 = vadd.f32 %v1140_v38, %v1139_v42  ;;  %v1147_v50 = vadd.f32 %v1146_v40, %v1145_v53  ;;  %1171 = vadd.xlane.f32.xlu1 (!%p1753_p8), %v1170_v4  ;;  %1825 = vmatpush3.bf16.msra.mxu1 (!%p1753_p8), %v2022_v22  ;;  %v1157_v38 = vld [vmem:[%s2997_s12] sm:$0x3] (!%p1753_p8) }
 0x2b2   : > { %1826 = vmatprep.subr.bf16.mxu1 (!%p1753_p8), %v2315_v19  ;;  %v1215_v10 = vrot.slane (!%p1753_p8), %v1157_v38, %v2723_v2  ;;  %v2025_v2 = vld [vmem:[#allocation13 + $0x30] sm:$0xff] (!%p1753_p8)  }
 0x2b3   : > { %1142 = vst [vmem:[#allocation2 + $0x10] sm:$0xff] %v1141_v56  ;;  %1148 = vst [vmem:[#allocation2 + $0x18] sm:$0xff] %v1147_v50  ;;  %1798 = vmatpush3.bf16.msra.mxu0 (!%p1753_p8), %v2014_v55 }
 0x2b4   : > { %1799 = vmatprep.subr.bf16.mxu0 %v2015_v14 }
 0x2b5   : > { %1827 = vmatpush3.bf16.msra.mxu1 %v2023_v23 }
 0x2b6   : > { %1828 = vmatprep.subr.bf16.mxu1 %v2315_v19 }
 0x2b7   : > { %1800 = vmatpush3.bf16.msra.mxu0 %v2016_v15 }
 0x2b8   : > { %1801 = vmatprep.subr.bf16.mxu0 %v2017_v16 }
 0x2ba   : > { %v2823_v6 = vld [vmem:[#allocation2 + $0x10] sm:$0xff]  ;;  %v2831_v5 = vld [vmem:[#allocation2 + $0x18] sm:$0xff] }
 0x2bb   : > { %v1168_v47 = vmul.f32 %v2823_v6, %v2823_v6  ;;  %v1169_v59 = vmul.f32 %v2831_v5, %v2831_v5  ;;  %v1161_v60 = vadd.f32 %v2831_v5, %v2823_v6  ;;  %1802 = vmatpush3.bf16.msra.mxu0 %v2018_v17  ;;  %v1771_v17 = vld [vmem:[%s2999_s22] ss:$0 sm:$0xff] }
 0x2bd   : > { %v1173_v61 = vadd.f32 %v1169_v59, %v1168_v47  ;;  %1162 = vadd.xlane.f32.xlu0 %v1161_v60 }
 0x2bf   : > { %1174 = vadd.xlane.f32.xlu1 %v1173_v61 }
 0x33c   : > { %v1160_v24 = vpop.xlane.xlu0 %1159 }
 0x33d   : > { %v1164_v25 = vmul.f32 0.03125, %v1160_v24 }
 0x33e   : > { %v1172_v26 = vpop.xlane.xlu1 %1171 }
 0x33f   : > { %v1176_v27 = vmul.f32 0.03125, %v1172_v26  ;;  %v1178_v28 = vmul.f32 %v1164_v25, %v1164_v25  ;;  %v1184_v49 = vsub.f32 %v2819_v54, %v1164_v25  ;;  %v1185_v51 = vsub.f32 %v2821_v57, %v1164_v25 }
 0x340   : > { %v1219_v54 = vrot.slane %v1157_v38, %v2725_v3  ;;  %v2026_v3 = vld [vmem:[#allocation13 + $0x38] sm:$0xff]  }
 0x341   : > { %v1180_v30 = vsub.f32 %v1176_v27, %v1178_v28 }
 0x343   : > { %v1182_v33 = vmax.f32 %v1180_v30, 0.0 }
 0x345   : > { %v1188_v37 = vadd.f32 1e-05, %v1182_v33 }
 0x347   : > { %2027 = vrsqrt.f32 %v1188_v37 }
 0x34a   : > { %v1163_v29 = vpop.xlane.xlu0 %1162 }
 0x34b   : > { %v1165_v31 = vmul.f32 0.03125, %v1163_v29 }
 0x34c   : > { %v1175_v32 = vpop.xlane.xlu1 %1174 }
 0x34d   : > { %v1177_v35 = vmul.f32 0.03125, %v1175_v32  ;;  %v1179_v36 = vmul.f32 %v1165_v31, %v1165_v31  ;;  %v1186_v53 = vsub.f32 %v2823_v6, %v1165_v31  ;;  %v1187_v56 = vsub.f32 %v2831_v5, %v1165_v31  ;;  %v2024_v6 = vld [vmem:[#allocation13 + $0x28] sm:$0xff]  }
 0x34e   : > { %1829 = vmatpush3.bf16.msra.mxu1 %v2024_v6 }
 0x34f   : > { %v1181_v41 = vsub.f32 %v1177_v35, %v1179_v36  ;;  %1830 = vmatprep.subr.bf16.mxu1 %v2315_v19 }
 0x351   : > { %v1183_v44 = vmax.f32 %v1181_v41, 0.0  ;;  %v2028_v48 = vpop.eup %2027 }
 0x352   : > { %v1193_v40 = vmul.f32 %v2028_v48, %v1185_v51  ;;  %v1192_v42 = vmul.f32 %v2028_v48, %v1184_v49  ;;  %1831 = vmatpush3.bf16.msra.mxu1 %v2025_v2 }
 0x353   : > { %v1189_v45 = vadd.f32 1e-05, %v1183_v44  ;;  %1832 = vmatprep.subr.bf16.mxu1 %v2315_v19 }
 0x354   : > { %v1208_v34 = vmul.f32 %v1204_v52, %v1193_v40  ;;  %v1207_v47 = vmul.f32 %v1200_v39, %v1192_v42 }
 0x355   : > { %2029 = vrsqrt.f32 %v1189_v45 }
 0x356   : > { %v1223_v60 = vadd.f32 %v1219_v54, %v1208_v34  ;;  %v1222_v62 = vadd.f32 %v1215_v10, %v1207_v47  ;;  %1833 = vmatpush3.bf16.msra.mxu1 %v2026_v3 }
 0x35f   : > { %v2030_v50 = vpop.eup %2029 }
 0x360   : > { %v1195_v57 = vmul.f32 %v2030_v50, %v1187_v56  ;;  %v1194_v58 = vmul.f32 %v2030_v50, %v1186_v53 }
 0x362   : > { %v1210_v59 = vmul.f32 %v1204_v52, %v1195_v57  ;;  %v1209_v4 = vmul.f32 %v1200_v39, %v1194_v58 }
 0x364   : > { %v1225_v61 = vadd.f32 %v1219_v54, %v1210_v59  ;;  %v1224_v63 = vadd.f32 %v1215_v10, %v1209_v4 }
 0x366   : > { %v1227_v0 = vpack.c.bf16 %v1225_v61, %v1223_v60  ;;  %v1226_v1 = vpack.c.bf16 %v1224_v63, %v1222_v62 }
 0x368   : > { %1395 = vmatprep.mubr.bf16.mxu0 %v1227_v0 }
 0x369   : > { %1396 = vmatmul.mubr.bf16.vlgmr.msra.gmra.mrb[0].mxu0 %v1226_v1 }
 0x43c   : > { %v1803_v5 = vpop.f32.mrb[0].mxu0 }
 0x43d   : > { %v1804_v8 = vpop.f32.mrb[1].mxu0 }
 0x43e   : > { %v1805_v9 = vadd.f32 %v1804_v8, %v1803_v5  ;;  %v1806_v11 = vpop.f32.mrb[2].mxu0 }
 0x43f   : > { %v1807_v12 = vpop.f32.mrb[3].mxu0 }
 0x440   : > { %v1398_v13 = vadd.f32 %v1805_v9, %v1754_v7  ;;  %v1808_v43 = vadd.f32 %v1807_v12, %v1806_v11 }
 0x442   : > { %v1401_v55 = vadd.f32 %v1808_v43, %v1754_v7  ;;  %v1404_v14 = vmax.f32 %v1398_v13, 0.0 }
 0x444   : > { %v1405_v15 = vmax.f32 %v1401_v55, 0.0 }
 0x446   : > { %v1406_v16 = vpack.c.bf16 %v1405_v15, %v1404_v14 }
 0x448   : > { %1835 = vmatmul.mubr.bf16.vlgmr.msra.gmra.mrb[0].mxu1 %v1406_v16 }
 0x51b   : > { %v1512_v18 = vpop.f32.mrb[0].mxu1 }
 0x51c   : > { %v1513_v19 = vadd.f32 %v1771_v17, %v1512_v18  ;;  %v1836_v20 = vpop.f32.mrb[1].mxu1 }
 0x51d   : > { %v1515_v21 = vpop.f32.mrb[2].mxu1 }
 0x51e   : > { %1519 = vst [vmem:[#allocation15] sm:$0xff] %v1513_v19  ;;  %v1516_v22 = vadd.f32 %v1771_v17, %v1515_v21  ;;  %v1837_v23 = vpop.f32.mrb[3].mxu1 }
 0x520   : > { %1520 = vst [vmem:[#allocation15 + $0x8] sm:$0xff] %v1516_v22 }
 0x521 PF: > { %s3000_s27 = sld [smem:[#allocation25_spill]]  ;;  %s2317_s2 = smov [#allocation15]  }
 0x522   : > { %s1530_s24 = sshll.u32 %s2317_s2, 4  ;;  %s1531_s24 = int_to_ptr.vmem [resolvable:$true] %s1530_s24 }
 0x523   : > { %s2205_s21 = scalar_lea.vmem %s1531_s24, 256  ;;  %p2212_p12 = scmp.lt.s32.totalorder %s1531_s24, %s1531_s24 }
 0x524   : > { %p2206_p13 = scmp.ne.s32.totalorder %s1531_s24, %s2205_s21  ;;  %p2213_p4 = scmp.lt.s32.totalorder %s2205_s21, %s2205_s21 }
 0x526   : > { %p2214_p2 = por %p2213_p4, %p2212_p12 }
 0x527   : > { %p1887_p11 = scmp.eq.s32.totalorder %s3000_s27, 1 }
 0x529   : > { %p2207_p10 = pnand %p2206_p13, %p1887_p11 }
 0x52b   : > { %p2208_p7 = pneg %p2207_p10 }
 0x52d   : > { %p2215_p6 = pnand %p2214_p2, %p2208_p7 }
 0x52f   : > { %2218 = shalt.err (!%p2215_p6)
}
 0x530   : > { %s3001_s14 = sld [smem:[#allocation37_spill]] }
 0x536   : > { %s2219_s15 = scalar_lea.hbm %s3001_s14, 256 }
 0x537   : > { %p2220_p1 = scmp.ne.s32.totalorder %s3001_s14, %s2219_s15  ;;  %p2225_p0 = scmp.lt.u32.totalorder %s2219_s15, %s3001_s14 }
 0x539   : > { %p2221_p9 = pnand %p2220_p1, %p1887_p11 }
 0x53b   : > { %p2222_p3 = pneg %p2221_p9 }
 0x53d   : > { %p2227_p5 = pnand %p2225_p0, %p2222_p3 }
 0x53f   : > { %2230 = shalt.err (!%p2227_p5)
}
 0x540   : > { %s2318_s20 = smov 128   ;;  %s2319_s9 = smov 8  }
 0x541   : > { %1857 = dma.vmem_to_hbm [thread:$0]  (%p1887_p11), %s1531_s24, 256, %s3001_s14, [#allocation6], %s2318_s20, %s2318_s20, %s2319_s9  }
 0x542   : > { %2276 = dma.done.wait (%p1887_p11), [#allocation6], 256  }
 0x543   : > { %2278 = vsyncadd (%p1887_p11), [#allocation6], 4294967040 }
 0x544 PF: > { %s31_s26 = sadd.s32 1, %s2301_s26   ;;  %s3002_s21 = sld [smem:[#allocation22_spill]] }
 0x545   : > { %p28_p8 = scmp.ge.s32.totalorder %s31_s26, 4   ;;  %s3003_s22 = sld [smem:[#allocation23_spill]] }
 0x546   : > { %s3004_s23 = sld [smem:[#allocation28_spill]]  ;;  %s3005_s16 = sld [smem:[#allocation27_spill]] }
 0x547   : > { %s3006_s24 = smov %s2297_s25  ;;  %30 = sbr.rel (!%p28_p8) target bundleno = 19 (0x13), region = 162 }
 0x54c   : > { %s3007_s25 = smov %s3005_s16 }
 0x54e   :  { %1546 = vsyncpa [#allocation5], 1 }
 0x54f   :  { %1548 = vsyncpa [#allocation5 + $0x1], 1 }
 0x550   :  { %1549 = vsyncpa [#allocation8], 1 }
 0x551   :  { %1551 = vsyncpa [#allocation8 + $0x1], 1 }
 0x552   :  { %1552 = vsyncpa [#allocation11], 1 }
 0x553   :  { %1554 = vsyncpa [#allocation11 + $0x1], 1 }
 0x554   :  { %1555 = vsyncpa [#allocation14], 1 }
 0x555   :  { %1556 = vsyncpa [#allocation6], 1 }
 0x556   :  { %1558 = vsyncpa [#allocation6 + $0x1], 1 }

</bundles_post_ra>
